<compile_context>
chip_gen: v5e
topology: v5e:2x2
jax: 0.10.0
libtpu: 0.0.40
codegen_flags: <defaults>
</compile_context>

<pallas_src>
import functools

import jax
import jax.numpy as jnp
from jax import lax
from jax.experimental import pallas as pl
from jax.experimental.pallas import tpu as pltpu

EPS = 1e-5


# ------------------------------ Pallas kernel ------------------------------ #

def yolo_block_kernel(x_ref, w1_ref, w2_ref, w3_ref, bn_ref, o_ref,
                      *, H, W, cp, c2p):
    """Fused YoloBlock forward.

    x_ref:  (Cin, M)        input activation, M = N*H*W (lane-dense)
    w1_ref: (Cp, Cin)       layer1 1x1 weight, out-channels padded to Cp
    w2_ref: (C2p, 9*Cp)     layer2 3x3 weight, packed lane-dense (tap-major K)
    w3_ref: (Cp, C2p)       layer3 1x1 weight, padded
    bn_ref: (3, C2p, 2)     packed per-layer (gamma, beta), channel-padded
    o_ref:  (Cp, M)         output (lane-dense, pad rows are zero)
    """
    M = x_ref.shape[1]
    inv_m = 1.0 / float(M)

    # ---- in-kernel spatial coordinates (no mask DMA) ---------------------- #
    def _floor_div(v, d):
        # Exact v // d for 0 <= v < ~2^23 : float estimate + one fixup step.
        q = jnp.floor(v.astype(jnp.float32) * (1.0 / d)).astype(jnp.int32)
        r = v - q * d
        return q + (r >= d).astype(jnp.int32) - (r < 0).astype(jnp.int32)

    idx = lax.broadcasted_iota(jnp.int32, (1, M), 1)   # flat n*H*W index
    q = _floor_div(idx, W)                             # n*H + h
    ww = idx - q * W                                   # w coordinate
    hh = q - _floor_div(q, H) * H                      # h coordinate

    ok_w = {-1: ww >= 1, 0: None, 1: ww <= W - 2}
    ok_h = {-1: hh >= 1, 0: None, 1: hh <= H - 2}

    masks = []                                         # 9 x ((1, M) f32 or None)
    for ky in range(3):
        for kx in range(3):
            mh, mw = ok_h[ky - 1], ok_w[kx - 1]
            if mh is None and mw is None:
                masks.append(None)
            elif mh is None:
                masks.append(mw.astype(jnp.float32))
            elif mw is None:
                masks.append(mh.astype(jnp.float32))
            else:
                masks.append((mh & mw).astype(jnp.float32))

    # ---- fused BN(training) + ReLU: y*scale + shift ----------------------- #
    def bn_relu(y, layer, c):
        g = bn_ref[layer, 0:c, 0:1]                    # (c, 1)
        b = bn_ref[layer, 0:c, 1:2]                    # (c, 1)
        s = jnp.sum(y, axis=1, keepdims=True)
        sq = jnp.sum(y * y, axis=1, keepdims=True)
        mean = s * inv_m
        var = jnp.maximum(sq * inv_m - mean * mean, 0.0)   # clamp (review note)
        scale = g * lax.rsqrt(var + EPS)               # EUP slot
        shift = b - mean * scale
        return jnp.maximum(y * scale + shift, 0.0)     # 2 VPU ops + relu

    def conv1x1(act, w):
        return jnp.dot(w, act, preferred_element_type=jnp.float32)

    def conv3x3(act):
        # act: (Cp, M). Build the 9-tap stacked slab, then one deep-K matmul.
        taps = []
        for ky in range(3):
            for kx in range(3):
                dy, dx = ky - 1, kx - 1
                if dy == 0 and dx == 0:
                    taps.append(act)
                else:
                    sh = (-(dy * W + dx)) % M          # shifted[m] = act[m + dy*W + dx]
                    shifted = pltpu.roll(act, shift=sh, axis=1)
                    taps.append(shifted * masks[ky * 3 + kx])
        slab = jnp.concatenate(taps, axis=0)           # (9*Cp, M), tile-aligned
        return jnp.dot(w2_ref[...], slab, preferred_element_type=jnp.float32)

    # layer1 -> layer2 -> layer3 -> layer2 -> layer3 (layer2/3 weights shared)
    a = bn_relu(conv1x1(x_ref[...], w1_ref[...]), 0, cp)
    a = bn_relu(conv3x3(a), 1, c2p)
    a = bn_relu(conv1x1(a, w3_ref[...]), 2, cp)
    a = bn_relu(conv3x3(a), 1, c2p)
    a = bn_relu(conv1x1(a, w3_ref[...]), 2, cp)
    o_ref[...] = a


# ------------------------------ host wrapper ------------------------------- #

def _full_spec(shape):
    return pl.BlockSpec(shape, lambda i, _s=len(shape): (0,) * _s)


def _round_up(x, m):
    return (x + m - 1) // m * m


def yolo_block_forward(x_nchw, params):
    n, cin, h, w = x_nchw.shape
    c = params["c_out"]
    m = n * h * w
    cp = _round_up(c, 8)            # pad out-channels to a sublane multiple
    c2p = _round_up(2 * c, 8)

    # One-time layout prep (NCHW -> lane-dense (C, M)).
    xc = jnp.transpose(x_nchw, (1, 0, 2, 3)).reshape(cin, m).astype(jnp.float32)

    # 1x1 weights, zero-padded on the out-channel axis.
    w1 = jnp.zeros((cp, cin), jnp.float32).at[:c, :].set(params["w1"][:, :, 0, 0])
    w3 = jnp.zeros((cp, c2p), jnp.float32).at[:c, :2 * c].set(params["w3"][:, :, 0, 0])

    # 3x3 weight packed lane-dense: column index = (ky*3 + kx)*Cp + cin,
    # matching the kernel's tap-stacked slab row order.
    w2p = jnp.zeros((c2p, cp, 3, 3), jnp.float32).at[:2 * c, :c].set(params["w2"])
    w2f = jnp.transpose(w2p, (0, 2, 3, 1)).reshape(c2p, 9 * cp)

    # Conv biases intentionally NOT passed: a per-channel bias added before
    # training-mode BatchNorm is exactly cancelled by the mean subtraction.
    bn = jnp.zeros((3, c2p, 2), jnp.float32)
    bn = bn.at[0, :c, 0].set(params["g1"]).at[0, :c, 1].set(params["b1"])
    bn = bn.at[1, :2 * c, 0].set(params["g2"]).at[1, :2 * c, 1].set(params["b2"])
    bn = bn.at[2, :c, 0].set(params["g3"]).at[2, :c, 1].set(params["b3"])

    kernel = functools.partial(yolo_block_kernel, H=h, W=w, cp=cp, c2p=c2p)
    args = (xc, w1, w2f, w3, bn)
    out_cm = pl.pallas_call(
        kernel,
        out_shape=jax.ShapeDtypeStruct((cp, m), jnp.float32),
        grid=(1,),
        in_specs=[_full_spec(a.shape) for a in args],
        out_specs=pl.BlockSpec((cp, m), lambda i: (0, 0)),
        compiler_params=pltpu.CompilerParams(dimension_semantics=("arbitrary",)),
    )(*args)

    # (Cp, M) -> drop pad channels -> NCHW
    return jnp.transpose(out_cm[:c].reshape(c, n, h, w), (1, 0, 2, 3))


# --------------------------- pure-JAX reference ---------------------------- #

def _ref_convlayer(x, wgt, bias, gamma, beta, stride, pad):
    y = lax.conv_general_dilated(
        x, wgt, (stride, stride), [(pad, pad), (pad, pad)],
        dimension_numbers=("NCHW", "OIHW", "NCHW"))
    y = y + bias[None, :, None, None]
    mean = y.mean(axis=(0, 2, 3), keepdims=True)
    var = ((y - mean) ** 2).mean(axis=(0, 2, 3), keepdims=True)
    y = (y - mean) / jnp.sqrt(var + EPS) * gamma[None, :, None, None] \
        + beta[None, :, None, None]
    return jnp.maximum(y, 0.0)


def yolo_block_ref(x, p):
    l1 = lambda t: _ref_convlayer(t, p["w1"], p["bias1"], p["g1"], p["b1"], 1, 0)
    l2 = lambda t: _ref_convlayer(t, p["w2"], p["bias2"], p["g2"], p["b2"], 1, 1)
    l3 = lambda t: _ref_convlayer(t, p["w3"], p["bias3"], p["g3"], p["b3"], 1, 0)
    x = l1(x)
    x = l2(x)
    x = l3(x)
    x = l2(x)
    x = l3(x)
    return x


# ---------------------------------- main ----------------------------------- #

def _init_convlayer(keys, cout, cin, ks):
    kw, kb, kg, kbt = keys
    wgt = 0.1 * jax.random.normal(kw, (cout, cin, ks, ks), jnp.float32)  # OIHW
    bias = 0.1 * jax.random.normal(kb, (cout,), jnp.float32)
    gamma = 1.0 + 0.1 * jax.random.normal(kg, (cout,), jnp.float32)
    beta = 0.1 * jax.random.normal(kbt, (cout,), jnp.float32)
    return wgt, bias, gamma, beta


if __name__ == "__main__":
    key = jax.random.PRNGKey(0)
    in_channel, out_channel = 4, 4
    n, h, w = 2, 16, 16

    keys = jax.random.split(key, 13)
    x = jax.random.normal(keys[0], (n, in_channel, h, w), jnp.float32)

    w1, bias1, g1, b1 = _init_convlayer(keys[1:5], out_channel, in_channel, 1)
    w2, bias2, g2, b2 = _init_convlayer(keys[5:9], 2 * out_channel, out_channel, 3)
    w3, bias3, g3, b3 = _init_convlayer(keys[9:13], out_channel, 2 * out_channel, 1)

    params = dict(c_out=out_channel,
                  w1=w1, w2=w2, w3=w3,
                  bias1=bias1, bias2=bias2, bias3=bias3,
                  g1=g1, b1=b1, g2=g2, b2=b2, g3=g3, b3=b3)

    out = jax.block_until_ready(yolo_block_forward(x, params))
    ref = yolo_block_ref(x, params)

    assert out.shape == (n, out_channel, h, w), out.shape
    err = float(jnp.max(jnp.abs(out - ref)))
    assert jnp.allclose(out, ref, atol=5e-4, rtol=5e-4), err

    print("KERNEL_OK")
</pallas_src>

<mosaic_0001>
module attributes {stable_mosaic.version = 11 : i64} {
  func.func @yolo_block_kernel(%arg0: i32, %arg1: memref<4x512xf32, #tpu.memory_space<vmem>>, %arg2: memref<8x4xf32, #tpu.memory_space<vmem>>, %arg3: memref<8x72xf32, #tpu.memory_space<vmem>>, %arg4: memref<8x8xf32, #tpu.memory_space<vmem>>, %arg5: memref<3x8x2xf32, #tpu.memory_space<vmem>>, %arg6: memref<8x512xf32, #tpu.memory_space<vmem>>) attributes {dimension_semantics = [#tpu.dimension_semantics<arbitrary>], iteration_bounds = array<i64: 1>, scalar_prefetch = 0 : i64, scratch_operands = 0 : i64, tpu.core_type = #tpu.core_type<tc>, window_params = [{pipeline_mode = #tpu.pipeline_mode<synchronous>, transform_indices = @transform_0, window_bounds = array<i64: 4, 512>}, {pipeline_mode = #tpu.pipeline_mode<synchronous>, transform_indices = @transform_1, window_bounds = array<i64: 8, 4>}, {pipeline_mode = #tpu.pipeline_mode<synchronous>, transform_indices = @transform_2, window_bounds = array<i64: 8, 72>}, {pipeline_mode = #tpu.pipeline_mode<synchronous>, transform_indices = @transform_3, window_bounds = array<i64: 8, 8>}, {pipeline_mode = #tpu.pipeline_mode<synchronous>, transform_indices = @transform_4, window_bounds = array<i64: 3, 8, 2>}, {pipeline_mode = #tpu.pipeline_mode<synchronous>, transform_indices = @transform_5, window_bounds = array<i64: 8, 512>}]} {
    %0 = tpu.iota {dimensions = array<i32: 1>} : vector<1x512xi32>
    %1 = arith.sitofp %0 : vector<1x512xi32> to vector<1x512xf32>
    %cst = arith.constant 6.250000e-02 : f32
    %2 = vector.broadcast %cst : f32 to vector<1x512xf32>
    %3 = arith.mulf %1, %2 : vector<1x512xf32>
    %4 = math.floor %3 : vector<1x512xf32>
    %5 = arith.fptosi %4 : vector<1x512xf32> to vector<1x512xi32>
    %c16_i32 = arith.constant 16 : i32
    %6 = vector.broadcast %c16_i32 : i32 to vector<1x512xi32>
    %7 = arith.muli %5, %6 : vector<1x512xi32>
    %8 = arith.subi %0, %7 : vector<1x512xi32>
    %c16_i32_0 = arith.constant 16 : i32
    %9 = vector.broadcast %c16_i32_0 : i32 to vector<1x512xi32>
    %10 = arith.cmpi sge, %8, %9 : vector<1x512xi32>
    %11 = arith.extui %10 : vector<1x512xi1> to vector<1x512xi32>
    %12 = arith.addi %5, %11 : vector<1x512xi32>
    %c0_i32 = arith.constant 0 : i32
    %13 = vector.broadcast %c0_i32 : i32 to vector<1x512xi32>
    %14 = arith.cmpi slt, %8, %13 : vector<1x512xi32>
    %15 = arith.extui %14 : vector<1x512xi1> to vector<1x512xi32>
    %16 = arith.subi %12, %15 : vector<1x512xi32>
    %c16_i32_1 = arith.constant 16 : i32
    %17 = vector.broadcast %c16_i32_1 : i32 to vector<1x512xi32>
    %18 = arith.muli %16, %17 : vector<1x512xi32>
    %19 = arith.subi %0, %18 : vector<1x512xi32>
    %20 = arith.sitofp %16 : vector<1x512xi32> to vector<1x512xf32>
    %cst_2 = arith.constant 6.250000e-02 : f32
    %21 = vector.broadcast %cst_2 : f32 to vector<1x512xf32>
    %22 = arith.mulf %20, %21 : vector<1x512xf32>
    %23 = math.floor %22 : vector<1x512xf32>
    %24 = arith.fptosi %23 : vector<1x512xf32> to vector<1x512xi32>
    %c16_i32_3 = arith.constant 16 : i32
    %25 = vector.broadcast %c16_i32_3 : i32 to vector<1x512xi32>
    %26 = arith.muli %24, %25 : vector<1x512xi32>
    %27 = arith.subi %16, %26 : vector<1x512xi32>
    %c16_i32_4 = arith.constant 16 : i32
    %28 = vector.broadcast %c16_i32_4 : i32 to vector<1x512xi32>
    %29 = arith.cmpi sge, %27, %28 : vector<1x512xi32>
    %30 = arith.extui %29 : vector<1x512xi1> to vector<1x512xi32>
    %31 = arith.addi %24, %30 : vector<1x512xi32>
    %c0_i32_5 = arith.constant 0 : i32
    %32 = vector.broadcast %c0_i32_5 : i32 to vector<1x512xi32>
    %33 = arith.cmpi slt, %27, %32 : vector<1x512xi32>
    %34 = arith.extui %33 : vector<1x512xi1> to vector<1x512xi32>
    %35 = arith.subi %31, %34 : vector<1x512xi32>
    %c16_i32_6 = arith.constant 16 : i32
    %36 = vector.broadcast %c16_i32_6 : i32 to vector<1x512xi32>
    %37 = arith.muli %35, %36 : vector<1x512xi32>
    %38 = arith.subi %16, %37 : vector<1x512xi32>
    %c1_i32 = arith.constant 1 : i32
    %39 = vector.broadcast %c1_i32 : i32 to vector<1x512xi32>
    %40 = arith.cmpi sge, %19, %39 : vector<1x512xi32>
    %c14_i32 = arith.constant 14 : i32
    %41 = vector.broadcast %c14_i32 : i32 to vector<1x512xi32>
    %42 = arith.cmpi sle, %19, %41 : vector<1x512xi32>
    %c1_i32_7 = arith.constant 1 : i32
    %43 = vector.broadcast %c1_i32_7 : i32 to vector<1x512xi32>
    %44 = arith.cmpi sge, %38, %43 : vector<1x512xi32>
    %c14_i32_8 = arith.constant 14 : i32
    %45 = vector.broadcast %c14_i32_8 : i32 to vector<1x512xi32>
    %46 = arith.cmpi sle, %38, %45 : vector<1x512xi32>
    %47 = arith.andi %44, %40 : vector<1x512xi1>
    %48 = arith.extui %47 : vector<1x512xi1> to vector<1x512xi32>
    %49 = arith.sitofp %48 : vector<1x512xi32> to vector<1x512xf32>
    %50 = arith.extui %44 : vector<1x512xi1> to vector<1x512xi32>
    %51 = arith.sitofp %50 : vector<1x512xi32> to vector<1x512xf32>
    %52 = arith.andi %44, %42 : vector<1x512xi1>
    %53 = arith.extui %52 : vector<1x512xi1> to vector<1x512xi32>
    %54 = arith.sitofp %53 : vector<1x512xi32> to vector<1x512xf32>
    %55 = arith.extui %40 : vector<1x512xi1> to vector<1x512xi32>
    %56 = arith.sitofp %55 : vector<1x512xi32> to vector<1x512xf32>
    %57 = arith.extui %42 : vector<1x512xi1> to vector<1x512xi32>
    %58 = arith.sitofp %57 : vector<1x512xi32> to vector<1x512xf32>
    %59 = arith.andi %46, %40 : vector<1x512xi1>
    %60 = arith.extui %59 : vector<1x512xi1> to vector<1x512xi32>
    %61 = arith.sitofp %60 : vector<1x512xi32> to vector<1x512xf32>
    %62 = arith.extui %46 : vector<1x512xi1> to vector<1x512xi32>
    %63 = arith.sitofp %62 : vector<1x512xi32> to vector<1x512xf32>
    %64 = arith.andi %46, %42 : vector<1x512xi1>
    %65 = arith.extui %64 : vector<1x512xi1> to vector<1x512xi32>
    %66 = arith.sitofp %65 : vector<1x512xi32> to vector<1x512xf32>
    %c0 = arith.constant 0 : index
    %c0_9 = arith.constant 0 : index
    %67 = vector.load %arg1[%c0, %c0_9] : memref<4x512xf32, #tpu.memory_space<vmem>>, vector<4x512xf32>
    %c0_10 = arith.constant 0 : index
    %c0_11 = arith.constant 0 : index
    %68 = vector.load %arg2[%c0_10, %c0_11] : memref<8x4xf32, #tpu.memory_space<vmem>>, vector<8x4xf32>
    %cst_12 = arith.constant dense<0.000000e+00> : vector<8x512xf32>
    %69 = tpu.matmul %68, %67, %cst_12 {dimension_numbers = #tpu.dot_dimension_numbers<[1], [0], [0], [1], [0, 0, 1, 1], [], []>} : vector<8x4xf32>, vector<4x512xf32>, vector<8x512xf32> -> vector<8x512xf32>
    %c0_13 = arith.constant 0 : index
    %c0_14 = arith.constant 0 : index
    %c0_15 = arith.constant 0 : index
    %70 = vector.load %arg5[%c0_13, %c0_14, %c0_15] : memref<3x8x2xf32, #tpu.memory_space<vmem>>, vector<1x8x1xf32>
    %71 = vector.shape_cast %70 : vector<1x8x1xf32> to vector<8x1xf32>
    %c0_16 = arith.constant 0 : index
    %c0_17 = arith.constant 0 : index
    %c1 = arith.constant 1 : index
    %72 = vector.load %arg5[%c0_16, %c0_17, %c1] : memref<3x8x2xf32, #tpu.memory_space<vmem>>, vector<1x8x1xf32>
    %73 = vector.shape_cast %72 : vector<1x8x1xf32> to vector<8x1xf32>
    %cst_18 = arith.constant dense<0.000000e+00> : vector<8xf32>
    %74 = vector.multi_reduction <add>, %69, %cst_18 [1] : vector<8x512xf32> to vector<8xf32>
    %75 = vector.shape_cast %74 : vector<8xf32> to vector<8x1xf32>
    %76 = arith.mulf %69, %69 : vector<8x512xf32>
    %cst_19 = arith.constant dense<0.000000e+00> : vector<8xf32>
    %77 = vector.multi_reduction <add>, %76, %cst_19 [1] : vector<8x512xf32> to vector<8xf32>
    %78 = vector.shape_cast %77 : vector<8xf32> to vector<8x1xf32>
    %cst_20 = arith.constant 0.001953125 : f32
    %79 = vector.broadcast %cst_20 : f32 to vector<8x1xf32>
    %80 = arith.mulf %75, %79 : vector<8x1xf32>
    %cst_21 = arith.constant 0.001953125 : f32
    %81 = vector.broadcast %cst_21 : f32 to vector<8x1xf32>
    %82 = arith.mulf %78, %81 : vector<8x1xf32>
    %83 = arith.mulf %80, %80 : vector<8x1xf32>
    %84 = arith.subf %82, %83 : vector<8x1xf32>
    %cst_22 = arith.constant 0.000000e+00 : f32
    %85 = vector.broadcast %cst_22 : f32 to vector<8x1xf32>
    %86 = arith.maximumf %84, %85 : vector<8x1xf32>
    %cst_23 = arith.constant 9.99999974E-6 : f32
    %87 = vector.broadcast %cst_23 : f32 to vector<8x1xf32>
    %88 = arith.addf %86, %87 : vector<8x1xf32>
    %89 = math.rsqrt %88 : vector<8x1xf32>
    %90 = arith.mulf %71, %89 : vector<8x1xf32>
    %91 = arith.mulf %80, %90 : vector<8x1xf32>
    %92 = arith.subf %73, %91 : vector<8x1xf32>
    %93 = vector.broadcast %90 : vector<8x1xf32> to vector<8x512xf32>
    %94 = arith.mulf %69, %93 : vector<8x512xf32>
    %95 = vector.broadcast %92 : vector<8x1xf32> to vector<8x512xf32>
    %96 = arith.addf %94, %95 : vector<8x512xf32>
    %cst_24 = arith.constant 0.000000e+00 : f32
    %97 = vector.broadcast %cst_24 : f32 to vector<8x512xf32>
    %98 = arith.maximumf %96, %97 : vector<8x512xf32>
    %c17_i32 = arith.constant 17 : i32
    %99 = tpu.dynamic_rotate %98 by %c17_i32 dim 1 : vector<8x512xf32>, i32 -> vector<8x512xf32>
    %100 = vector.broadcast %49 : vector<1x512xf32> to vector<8x512xf32>
    %101 = arith.mulf %99, %100 : vector<8x512xf32>
    %c16_i32_25 = arith.constant 16 : i32
    %102 = tpu.dynamic_rotate %98 by %c16_i32_25 dim 1 : vector<8x512xf32>, i32 -> vector<8x512xf32>
    %103 = vector.broadcast %51 : vector<1x512xf32> to vector<8x512xf32>
    %104 = arith.mulf %102, %103 : vector<8x512xf32>
    %c15_i32 = arith.constant 15 : i32
    %105 = tpu.dynamic_rotate %98 by %c15_i32 dim 1 : vector<8x512xf32>, i32 -> vector<8x512xf32>
    %106 = vector.broadcast %54 : vector<1x512xf32> to vector<8x512xf32>
    %107 = arith.mulf %105, %106 : vector<8x512xf32>
    %c1_i32_26 = arith.constant 1 : i32
    %108 = tpu.dynamic_rotate %98 by %c1_i32_26 dim 1 : vector<8x512xf32>, i32 -> vector<8x512xf32>
    %109 = vector.broadcast %56 : vector<1x512xf32> to vector<8x512xf32>
    %110 = arith.mulf %108, %109 : vector<8x512xf32>
    %c511_i32 = arith.constant 511 : i32
    %111 = tpu.dynamic_rotate %98 by %c511_i32 dim 1 : vector<8x512xf32>, i32 -> vector<8x512xf32>
    %112 = vector.broadcast %58 : vector<1x512xf32> to vector<8x512xf32>
    %113 = arith.mulf %111, %112 : vector<8x512xf32>
    %c497_i32 = arith.constant 497 : i32
    %114 = tpu.dynamic_rotate %98 by %c497_i32 dim 1 : vector<8x512xf32>, i32 -> vector<8x512xf32>
    %115 = vector.broadcast %61 : vector<1x512xf32> to vector<8x512xf32>
    %116 = arith.mulf %114, %115 : vector<8x512xf32>
    %c496_i32 = arith.constant 496 : i32
    %117 = tpu.dynamic_rotate %98 by %c496_i32 dim 1 : vector<8x512xf32>, i32 -> vector<8x512xf32>
    %118 = vector.broadcast %63 : vector<1x512xf32> to vector<8x512xf32>
    %119 = arith.mulf %117, %118 : vector<8x512xf32>
    %c495_i32 = arith.constant 495 : i32
    %120 = tpu.dynamic_rotate %98 by %c495_i32 dim 1 : vector<8x512xf32>, i32 -> vector<8x512xf32>
    %121 = vector.broadcast %66 : vector<1x512xf32> to vector<8x512xf32>
    %122 = arith.mulf %120, %121 : vector<8x512xf32>
    %123 = tpu.concatenate %101, %104, %107, %110, %98, %113, %116, %119, %122 in 0 : vector<8x512xf32>, vector<8x512xf32>, vector<8x512xf32>, vector<8x512xf32>, vector<8x512xf32>, vector<8x512xf32>, vector<8x512xf32>, vector<8x512xf32>, vector<8x512xf32> -> vector<72x512xf32>
    %c0_27 = arith.constant 0 : index
    %c0_28 = arith.constant 0 : index
    %124 = vector.load %arg3[%c0_27, %c0_28] : memref<8x72xf32, #tpu.memory_space<vmem>>, vector<8x72xf32>
    %cst_29 = arith.constant dense<0.000000e+00> : vector<8x512xf32>
    %125 = tpu.matmul %124, %123, %cst_29 {dimension_numbers = #tpu.dot_dimension_numbers<[1], [0], [0], [1], [0, 0, 1, 1], [], []>} : vector<8x72xf32>, vector<72x512xf32>, vector<8x512xf32> -> vector<8x512xf32>
    %c1_30 = arith.constant 1 : index
    %c0_31 = arith.constant 0 : index
    %c0_32 = arith.constant 0 : index
    %126 = vector.load %arg5[%c1_30, %c0_31, %c0_32] : memref<3x8x2xf32, #tpu.memory_space<vmem>>, vector<1x8x1xf32>
    %127 = vector.shape_cast %126 : vector<1x8x1xf32> to vector<8x1xf32>
    %c1_33 = arith.constant 1 : index
    %c0_34 = arith.constant 0 : index
    %c1_35 = arith.constant 1 : index
    %128 = vector.load %arg5[%c1_33, %c0_34, %c1_35] : memref<3x8x2xf32, #tpu.memory_space<vmem>>, vector<1x8x1xf32>
    %129 = vector.shape_cast %128 : vector<1x8x1xf32> to vector<8x1xf32>
    %cst_36 = arith.constant dense<0.000000e+00> : vector<8xf32>
    %130 = vector.multi_reduction <add>, %125, %cst_36 [1] : vector<8x512xf32> to vector<8xf32>
    %131 = vector.shape_cast %130 : vector<8xf32> to vector<8x1xf32>
    %132 = arith.mulf %125, %125 : vector<8x512xf32>
    %cst_37 = arith.constant dense<0.000000e+00> : vector<8xf32>
    %133 = vector.multi_reduction <add>, %132, %cst_37 [1] : vector<8x512xf32> to vector<8xf32>
    %134 = vector.shape_cast %133 : vector<8xf32> to vector<8x1xf32>
    %cst_38 = arith.constant 0.001953125 : f32
    %135 = vector.broadcast %cst_38 : f32 to vector<8x1xf32>
    %136 = arith.mulf %131, %135 : vector<8x1xf32>
    %cst_39 = arith.constant 0.001953125 : f32
    %137 = vector.broadcast %cst_39 : f32 to vector<8x1xf32>
    %138 = arith.mulf %134, %137 : vector<8x1xf32>
    %139 = arith.mulf %136, %136 : vector<8x1xf32>
    %140 = arith.subf %138, %139 : vector<8x1xf32>
    %cst_40 = arith.constant 0.000000e+00 : f32
    %141 = vector.broadcast %cst_40 : f32 to vector<8x1xf32>
    %142 = arith.maximumf %140, %141 : vector<8x1xf32>
    %cst_41 = arith.constant 9.99999974E-6 : f32
    %143 = vector.broadcast %cst_41 : f32 to vector<8x1xf32>
    %144 = arith.addf %142, %143 : vector<8x1xf32>
    %145 = math.rsqrt %144 : vector<8x1xf32>
    %146 = arith.mulf %127, %145 : vector<8x1xf32>
    %147 = arith.mulf %136, %146 : vector<8x1xf32>
    %148 = arith.subf %129, %147 : vector<8x1xf32>
    %149 = vector.broadcast %146 : vector<8x1xf32> to vector<8x512xf32>
    %150 = arith.mulf %125, %149 : vector<8x512xf32>
    %151 = vector.broadcast %148 : vector<8x1xf32> to vector<8x512xf32>
    %152 = arith.addf %150, %151 : vector<8x512xf32>
    %cst_42 = arith.constant 0.000000e+00 : f32
    %153 = vector.broadcast %cst_42 : f32 to vector<8x512xf32>
    %154 = arith.maximumf %152, %153 : vector<8x512xf32>
    %c0_43 = arith.constant 0 : index
    %c0_44 = arith.constant 0 : index
    %155 = vector.load %arg4[%c0_43, %c0_44] : memref<8x8xf32, #tpu.memory_space<vmem>>, vector<8x8xf32>
    %cst_45 = arith.constant dense<0.000000e+00> : vector<8x512xf32>
    %156 = tpu.matmul %155, %154, %cst_45 {dimension_numbers = #tpu.dot_dimension_numbers<[1], [0], [0], [1], [0, 0, 1, 1], [], []>} : vector<8x8xf32>, vector<8x512xf32>, vector<8x512xf32> -> vector<8x512xf32>
    %c2 = arith.constant 2 : index
    %c0_46 = arith.constant 0 : index
    %c0_47 = arith.constant 0 : index
    %157 = vector.load %arg5[%c2, %c0_46, %c0_47] : memref<3x8x2xf32, #tpu.memory_space<vmem>>, vector<1x8x1xf32>
    %158 = vector.shape_cast %157 : vector<1x8x1xf32> to vector<8x1xf32>
    %c2_48 = arith.constant 2 : index
    %c0_49 = arith.constant 0 : index
    %c1_50 = arith.constant 1 : index
    %159 = vector.load %arg5[%c2_48, %c0_49, %c1_50] : memref<3x8x2xf32, #tpu.memory_space<vmem>>, vector<1x8x1xf32>
    %160 = vector.shape_cast %159 : vector<1x8x1xf32> to vector<8x1xf32>
    %cst_51 = arith.constant dense<0.000000e+00> : vector<8xf32>
    %161 = vector.multi_reduction <add>, %156, %cst_51 [1] : vector<8x512xf32> to vector<8xf32>
    %162 = vector.shape_cast %161 : vector<8xf32> to vector<8x1xf32>
    %163 = arith.mulf %156, %156 : vector<8x512xf32>
    %cst_52 = arith.constant dense<0.000000e+00> : vector<8xf32>
    %164 = vector.multi_reduction <add>, %163, %cst_52 [1] : vector<8x512xf32> to vector<8xf32>
    %165 = vector.shape_cast %164 : vector<8xf32> to vector<8x1xf32>
    %cst_53 = arith.constant 0.001953125 : f32
    %166 = vector.broadcast %cst_53 : f32 to vector<8x1xf32>
    %167 = arith.mulf %162, %166 : vector<8x1xf32>
    %cst_54 = arith.constant 0.001953125 : f32
    %168 = vector.broadcast %cst_54 : f32 to vector<8x1xf32>
    %169 = arith.mulf %165, %168 : vector<8x1xf32>
    %170 = arith.mulf %167, %167 : vector<8x1xf32>
    %171 = arith.subf %169, %170 : vector<8x1xf32>
    %cst_55 = arith.constant 0.000000e+00 : f32
    %172 = vector.broadcast %cst_55 : f32 to vector<8x1xf32>
    %173 = arith.maximumf %171, %172 : vector<8x1xf32>
    %cst_56 = arith.constant 9.99999974E-6 : f32
    %174 = vector.broadcast %cst_56 : f32 to vector<8x1xf32>
    %175 = arith.addf %173, %174 : vector<8x1xf32>
    %176 = math.rsqrt %175 : vector<8x1xf32>
    %177 = arith.mulf %158, %176 : vector<8x1xf32>
    %178 = arith.mulf %167, %177 : vector<8x1xf32>
    %179 = arith.subf %160, %178 : vector<8x1xf32>
    %180 = vector.broadcast %177 : vector<8x1xf32> to vector<8x512xf32>
    %181 = arith.mulf %156, %180 : vector<8x512xf32>
    %182 = vector.broadcast %179 : vector<8x1xf32> to vector<8x512xf32>
    %183 = arith.addf %181, %182 : vector<8x512xf32>
    %cst_57 = arith.constant 0.000000e+00 : f32
    %184 = vector.broadcast %cst_57 : f32 to vector<8x512xf32>
    %185 = arith.maximumf %183, %184 : vector<8x512xf32>
    %c17_i32_58 = arith.constant 17 : i32
    %186 = tpu.dynamic_rotate %185 by %c17_i32_58 dim 1 : vector<8x512xf32>, i32 -> vector<8x512xf32>
    %187 = vector.broadcast %49 : vector<1x512xf32> to vector<8x512xf32>
    %188 = arith.mulf %186, %187 : vector<8x512xf32>
    %c16_i32_59 = arith.constant 16 : i32
    %189 = tpu.dynamic_rotate %185 by %c16_i32_59 dim 1 : vector<8x512xf32>, i32 -> vector<8x512xf32>
    %190 = vector.broadcast %51 : vector<1x512xf32> to vector<8x512xf32>
    %191 = arith.mulf %189, %190 : vector<8x512xf32>
    %c15_i32_60 = arith.constant 15 : i32
    %192 = tpu.dynamic_rotate %185 by %c15_i32_60 dim 1 : vector<8x512xf32>, i32 -> vector<8x512xf32>
    %193 = vector.broadcast %54 : vector<1x512xf32> to vector<8x512xf32>
    %194 = arith.mulf %192, %193 : vector<8x512xf32>
    %c1_i32_61 = arith.constant 1 : i32
    %195 = tpu.dynamic_rotate %185 by %c1_i32_61 dim 1 : vector<8x512xf32>, i32 -> vector<8x512xf32>
    %196 = vector.broadcast %56 : vector<1x512xf32> to vector<8x512xf32>
    %197 = arith.mulf %195, %196 : vector<8x512xf32>
    %c511_i32_62 = arith.constant 511 : i32
    %198 = tpu.dynamic_rotate %185 by %c511_i32_62 dim 1 : vector<8x512xf32>, i32 -> vector<8x512xf32>
    %199 = vector.broadcast %58 : vector<1x512xf32> to vector<8x512xf32>
    %200 = arith.mulf %198, %199 : vector<8x512xf32>
    %c497_i32_63 = arith.constant 497 : i32
    %201 = tpu.dynamic_rotate %185 by %c497_i32_63 dim 1 : vector<8x512xf32>, i32 -> vector<8x512xf32>
    %202 = vector.broadcast %61 : vector<1x512xf32> to vector<8x512xf32>
    %203 = arith.mulf %201, %202 : vector<8x512xf32>
    %c496_i32_64 = arith.constant 496 : i32
    %204 = tpu.dynamic_rotate %185 by %c496_i32_64 dim 1 : vector<8x512xf32>, i32 -> vector<8x512xf32>
    %205 = vector.broadcast %63 : vector<1x512xf32> to vector<8x512xf32>
    %206 = arith.mulf %204, %205 : vector<8x512xf32>
    %c495_i32_65 = arith.constant 495 : i32
    %207 = tpu.dynamic_rotate %185 by %c495_i32_65 dim 1 : vector<8x512xf32>, i32 -> vector<8x512xf32>
    %208 = vector.broadcast %66 : vector<1x512xf32> to vector<8x512xf32>
    %209 = arith.mulf %207, %208 : vector<8x512xf32>
    %210 = tpu.concatenate %188, %191, %194, %197, %185, %200, %203, %206, %209 in 0 : vector<8x512xf32>, vector<8x512xf32>, vector<8x512xf32>, vector<8x512xf32>, vector<8x512xf32>, vector<8x512xf32>, vector<8x512xf32>, vector<8x512xf32>, vector<8x512xf32> -> vector<72x512xf32>
    %c0_66 = arith.constant 0 : index
    %c0_67 = arith.constant 0 : index
    %211 = vector.load %arg3[%c0_66, %c0_67] : memref<8x72xf32, #tpu.memory_space<vmem>>, vector<8x72xf32>
    %cst_68 = arith.constant dense<0.000000e+00> : vector<8x512xf32>
    %212 = tpu.matmul %211, %210, %cst_68 {dimension_numbers = #tpu.dot_dimension_numbers<[1], [0], [0], [1], [0, 0, 1, 1], [], []>} : vector<8x72xf32>, vector<72x512xf32>, vector<8x512xf32> -> vector<8x512xf32>
    %c1_69 = arith.constant 1 : index
    %c0_70 = arith.constant 0 : index
    %c0_71 = arith.constant 0 : index
    %213 = vector.load %arg5[%c1_69, %c0_70, %c0_71] : memref<3x8x2xf32, #tpu.memory_space<vmem>>, vector<1x8x1xf32>
    %214 = vector.shape_cast %213 : vector<1x8x1xf32> to vector<8x1xf32>
    %c1_72 = arith.constant 1 : index
    %c0_73 = arith.constant 0 : index
    %c1_74 = arith.constant 1 : index
    %215 = vector.load %arg5[%c1_72, %c0_73, %c1_74] : memref<3x8x2xf32, #tpu.memory_space<vmem>>, vector<1x8x1xf32>
    %216 = vector.shape_cast %215 : vector<1x8x1xf32> to vector<8x1xf32>
    %cst_75 = arith.constant dense<0.000000e+00> : vector<8xf32>
    %217 = vector.multi_reduction <add>, %212, %cst_75 [1] : vector<8x512xf32> to vector<8xf32>
    %218 = vector.shape_cast %217 : vector<8xf32> to vector<8x1xf32>
    %219 = arith.mulf %212, %212 : vector<8x512xf32>
    %cst_76 = arith.constant dense<0.000000e+00> : vector<8xf32>
    %220 = vector.multi_reduction <add>, %219, %cst_76 [1] : vector<8x512xf32> to vector<8xf32>
    %221 = vector.shape_cast %220 : vector<8xf32> to vector<8x1xf32>
    %cst_77 = arith.constant 0.001953125 : f32
    %222 = vector.broadcast %cst_77 : f32 to vector<8x1xf32>
    %223 = arith.mulf %218, %222 : vector<8x1xf32>
    %cst_78 = arith.constant 0.001953125 : f32
    %224 = vector.broadcast %cst_78 : f32 to vector<8x1xf32>
    %225 = arith.mulf %221, %224 : vector<8x1xf32>
    %226 = arith.mulf %223, %223 : vector<8x1xf32>
    %227 = arith.subf %225, %226 : vector<8x1xf32>
    %cst_79 = arith.constant 0.000000e+00 : f32
    %228 = vector.broadcast %cst_79 : f32 to vector<8x1xf32>
    %229 = arith.maximumf %227, %228 : vector<8x1xf32>
    %cst_80 = arith.constant 9.99999974E-6 : f32
    %230 = vector.broadcast %cst_80 : f32 to vector<8x1xf32>
    %231 = arith.addf %229, %230 : vector<8x1xf32>
    %232 = math.rsqrt %231 : vector<8x1xf32>
    %233 = arith.mulf %214, %232 : vector<8x1xf32>
    %234 = arith.mulf %223, %233 : vector<8x1xf32>
    %235 = arith.subf %216, %234 : vector<8x1xf32>
    %236 = vector.broadcast %233 : vector<8x1xf32> to vector<8x512xf32>
    %237 = arith.mulf %212, %236 : vector<8x512xf32>
    %238 = vector.broadcast %235 : vector<8x1xf32> to vector<8x512xf32>
    %239 = arith.addf %237, %238 : vector<8x512xf32>
    %cst_81 = arith.constant 0.000000e+00 : f32
    %240 = vector.broadcast %cst_81 : f32 to vector<8x512xf32>
    %241 = arith.maximumf %239, %240 : vector<8x512xf32>
    %c0_82 = arith.constant 0 : index
    %c0_83 = arith.constant 0 : index
    %242 = vector.load %arg4[%c0_82, %c0_83] : memref<8x8xf32, #tpu.memory_space<vmem>>, vector<8x8xf32>
    %cst_84 = arith.constant dense<0.000000e+00> : vector<8x512xf32>
    %243 = tpu.matmul %242, %241, %cst_84 {dimension_numbers = #tpu.dot_dimension_numbers<[1], [0], [0], [1], [0, 0, 1, 1], [], []>} : vector<8x8xf32>, vector<8x512xf32>, vector<8x512xf32> -> vector<8x512xf32>
    %c2_85 = arith.constant 2 : index
    %c0_86 = arith.constant 0 : index
    %c0_87 = arith.constant 0 : index
    %244 = vector.load %arg5[%c2_85, %c0_86, %c0_87] : memref<3x8x2xf32, #tpu.memory_space<vmem>>, vector<1x8x1xf32>
    %245 = vector.shape_cast %244 : vector<1x8x1xf32> to vector<8x1xf32>
    %c2_88 = arith.constant 2 : index
    %c0_89 = arith.constant 0 : index
    %c1_90 = arith.constant 1 : index
    %246 = vector.load %arg5[%c2_88, %c0_89, %c1_90] : memref<3x8x2xf32, #tpu.memory_space<vmem>>, vector<1x8x1xf32>
    %247 = vector.shape_cast %246 : vector<1x8x1xf32> to vector<8x1xf32>
    %cst_91 = arith.constant dense<0.000000e+00> : vector<8xf32>
    %248 = vector.multi_reduction <add>, %243, %cst_91 [1] : vector<8x512xf32> to vector<8xf32>
    %249 = vector.shape_cast %248 : vector<8xf32> to vector<8x1xf32>
    %250 = arith.mulf %243, %243 : vector<8x512xf32>
    %cst_92 = arith.constant dense<0.000000e+00> : vector<8xf32>
    %251 = vector.multi_reduction <add>, %250, %cst_92 [1] : vector<8x512xf32> to vector<8xf32>
    %252 = vector.shape_cast %251 : vector<8xf32> to vector<8x1xf32>
    %cst_93 = arith.constant 0.001953125 : f32
    %253 = vector.broadcast %cst_93 : f32 to vector<8x1xf32>
    %254 = arith.mulf %249, %253 : vector<8x1xf32>
    %cst_94 = arith.constant 0.001953125 : f32
    %255 = vector.broadcast %cst_94 : f32 to vector<8x1xf32>
    %256 = arith.mulf %252, %255 : vector<8x1xf32>
    %257 = arith.mulf %254, %254 : vector<8x1xf32>
    %258 = arith.subf %256, %257 : vector<8x1xf32>
    %cst_95 = arith.constant 0.000000e+00 : f32
    %259 = vector.broadcast %cst_95 : f32 to vector<8x1xf32>
    %260 = arith.maximumf %258, %259 : vector<8x1xf32>
    %cst_96 = arith.constant 9.99999974E-6 : f32
    %261 = vector.broadcast %cst_96 : f32 to vector<8x1xf32>
    %262 = arith.addf %260, %261 : vector<8x1xf32>
    %263 = math.rsqrt %262 : vector<8x1xf32>
    %264 = arith.mulf %245, %263 : vector<8x1xf32>
    %265 = arith.mulf %254, %264 : vector<8x1xf32>
    %266 = arith.subf %247, %265 : vector<8x1xf32>
    %267 = vector.broadcast %264 : vector<8x1xf32> to vector<8x512xf32>
    %268 = arith.mulf %243, %267 : vector<8x512xf32>
    %269 = vector.broadcast %266 : vector<8x1xf32> to vector<8x512xf32>
    %270 = arith.addf %268, %269 : vector<8x512xf32>
    %cst_97 = arith.constant 0.000000e+00 : f32
    %271 = vector.broadcast %cst_97 : f32 to vector<8x512xf32>
    %272 = arith.maximumf %270, %271 : vector<8x512xf32>
    %c0_98 = arith.constant 0 : index
    %c0_99 = arith.constant 0 : index
    %273 = vector.load %arg6[%c0_98, %c0_99] : memref<8x512xf32, #tpu.memory_space<vmem>>, vector<8x512xf32>
    tpu.vector_store %arg6[%c0_98, %c0_99], %272 {strides = array<i32>} : memref<8x512xf32, #tpu.memory_space<vmem>>, vector<8x512xf32>,
    return
  }
  func.func @transform_0(%arg0: i32) -> (i32, i32) {
    %c0_i32 = arith.constant 0 : i32
    %c0_i32_0 = arith.constant 0 : i32
    %c0_i32_1 = arith.constant 0 : i32
    return %c0_i32, %c0_i32_0 : i32, i32
  }
  func.func @transform_1(%arg0: i32) -> (i32, i32) {
    %c0_i32 = arith.constant 0 : i32
    %c0_i32_0 = arith.constant 0 : i32
    %c0_i32_1 = arith.constant 0 : i32
    return %c0_i32, %c0_i32_0 : i32, i32
  }
  func.func @transform_2(%arg0: i32) -> (i32, i32) {
    %c0_i32 = arith.constant 0 : i32
    %c0_i32_0 = arith.constant 0 : i32
    %c0_i32_1 = arith.constant 0 : i32
    return %c0_i32, %c0_i32_0 : i32, i32
  }
  func.func @transform_3(%arg0: i32) -> (i32, i32) {
    %c0_i32 = arith.constant 0 : i32
    %c0_i32_0 = arith.constant 0 : i32
    %c0_i32_1 = arith.constant 0 : i32
    return %c0_i32, %c0_i32_0 : i32, i32
  }
  func.func @transform_4(%arg0: i32) -> (i32, i32, i32) {
    %c0_i32 = arith.constant 0 : i32
    %c0_i32_0 = arith.constant 0 : i32
    %c0_i32_1 = arith.constant 0 : i32
    %c0_i32_2 = arith.constant 0 : i32
    return %c0_i32, %c0_i32_0, %c0_i32_1 : i32, i32, i32
  }
  func.func @transform_5(%arg0: i32) -> (i32, i32) {
    %c0_i32 = arith.constant 0 : i32
    %c0_i32_0 = arith.constant 0 : i32
    %c0_i32_1 = arith.constant 0 : i32
    return %c0_i32, %c0_i32_0 : i32, i32
  }
}

</mosaic_0001>

<bundles_post_ra>
// kernel: tpu_custom_call.1
= control target key start
LH: loop header
LB: loop body
LE: loop exit
PB: predicated region body
PF: predicated region fallthrough
CT: control target
= control target key end

     0   :  { %s2188_s0 = inlined_call_operand.vmem [shape: f32[4,512], index: 0, kind: input, shape index: {}]   ;;  %s2189_s1 = inlined_call_operand.vmem [shape: f32[8,4], index: 1, kind: input, shape index: {}]   ;;  %s2190_s2 = inlined_call_operand.vmem [shape: f32[8,72], index: 2, kind: input, shape index: {}]   ;;  %s2191_s3 = inlined_call_operand.vmem [shape: f32[8,8], index: 3, kind: input, shape index: {}]   ;;  %s2192_s4 = inlined_call_operand.vmem [shape: f32[3,8,2], index: 4, kind: input, shape index: {}]   ;;  %s2193_s5 = inlined_call_operand.hbm [shape: f32[8,512], index: 5, kind: output, shape index: {}]  }
   0x1   :  { %v235_v0 = vld [vmem:[%s2188_s0 + $0x8] sm:$0xff]  ;;  %v234_v1 = vld [vmem:[%s2188_s0] sm:$0xff] }
   0x2   :  { %241 = vst [vmem:[#allocation1 + $0x10] ss:$2 sm:$0xff] %v235_v0 }
   0x3   :  { %10 = vsyncpa [#allocation3], 0  ;;  %239 = vst [vmem:[#allocation1] ss:$2 sm:$0xff] %v234_v1  ;;  %vm250_vm0 = vcmask 1043456   ;;  %v236_v2 = vld [vmem:[%s2189_s1] sm:$0xff]  ;;  %v21_v57 = vlaneseq }
   0x4   :  { %vm246_vm1 = vcmask 31744   ;;  %v1383_v24 = vmov 0   ;;  %v339_v35 = vld [vmem:[%s2192_s4] sm:$0xff]  ;;  %s1384_s24 = smov 1   ;;  %v1385_v40 = vmov 1   ;;  %s1386_s25 = smov 111  }
   0x5   :  { %1339 = vset.pattern.permute.xlu1 %v1383_v24  ;;  %1343 = vset.pattern.permute.xlu0 %v1383_v24  ;;  %s1387_s26 = smov 112   ;;  %s1388_s27 = smov 113   ;;  %v1480_v58 = vand.u32 127, %v21_v57 }
   0x6   :  { %1340 = vset.pattern.permute.xlu2 %v1385_v40  ;;  %s1389_s28 = smov 127   ;;  %s1390_s29 = smov 15  }
   0x7   :  { %v1487_v59 = vadd.s32 256, %v1480_v58  ;;  %v1492_v60 = vadd.s32 384, %v1480_v58  ;;  %s1391_s30 = smov 17   ;;  %s1392_s6 = smov 16  }
   0x8   :  { %s1244_s16 = sshll.u32 %s2193_s5, 4  ;;  %s1245_s16 = int_to_ptr.hbm [resolvable:$true] %s1244_s16 }
   0x9   :  { %v244_v3 = vld.sshfl [vmem:[#allocation1 + $0x10] sm:$0xff pattern:$0x75316420]  ;;  %v245_v4 = vld.sshfl [vmem:[#allocation1 + $0x18] sm:$0xff pattern:$0x75316420]  ;;  %v28_v61 = vcvt.s32.f32 %v1487_v59  ;;  %v29_v62 = vcvt.s32.f32 %v1492_v60 }
   0xa   :  { %1289 = vmatpush.msk.msra.mxu2 %vm250_vm0, %v244_v3  ;;  %1291 = vmatpush.msk.msra.mxu3 %vm250_vm0, %v245_v4  ;;  %v242_v5 = vld.sshfl [vmem:[#allocation1] sm:$0xff pattern:$0x75316420]  ;;  %v243_v6 = vld.sshfl [vmem:[#allocation1 + $0x8] sm:$0xff pattern:$0x75316420] }
   0xb   :  { %1290 = vmatmul.msk.f32.vlgmr.msra.gmra.mxu2 %vm246_vm1, %v236_v2  ;;  %1292 = vmatmul.msk.f32.vlgmr.msra.gmra.mxu3 %vm246_vm1, %v236_v2  ;;  %v32_v63 = vmul.f32 0.0625, %v28_v61  ;;  %v33_v0 = vmul.f32 0.0625, %v29_v62  ;;  %v1501_v4 = vadd.s32 128, %v1480_v58 }
   0xc   :  { %1285 = vmatpush.msk.msra.mxu0 %vm250_vm0, %v242_v5  ;;  %1287 = vmatpush.msk.msra.mxu1 %vm250_vm0, %v243_v6 }
   0xd   :  { %1286 = vmatmul.msk.f32.vlgmr.msra.gmra.mxu0 %vm246_vm1, %v236_v2  ;;  %1288 = vmatmul.msk.f32.vlgmr.msra.gmra.mxu1 %vm246_vm1, %v236_v2  ;;  %v36_v1 = vfloor.f32 %v32_v63  ;;  %v37_v2 = vfloor.f32 %v33_v0 }
   0xf   :  { %v1316_v3 = vcvt.f32.s32 %v36_v1  ;;  %v1318_v5 = vcvt.f32.s32 %v37_v2 }
  0x11   :  { %v44_v6 = vmul.u32 16, %v1316_v3 }
  0x8a   :  { %v276_v7 = vpop.f32.mrf.mxu0  ;;  %v296_v8 = vpop.f32.mrf.mxu1 }
  0x8b   :  { %v340_v9 = vadd.f32 %v296_v8, %v276_v7  ;;  %v345_v10 = vmul.f32 %v276_v7, %v276_v7  ;;  %v346_v11 = vmul.f32 %v296_v8, %v296_v8 }
  0x8d   :  { %v349_v17 = vadd.f32 %v346_v11, %v345_v10  ;;  %v48_v10 = vsub.s32 %v1487_v59, %v44_v6 }
  0x8e   :  { %v316_v12 = vpop.f32.mrf.mxu2  ;;  %v336_v13 = vpop.f32.mrf.mxu3 }
  0x8f   :  { %v341_v14 = vadd.f32 %v340_v9, %v316_v12  ;;  %v347_v15 = vmul.f32 %v316_v12, %v316_v12  ;;  %v348_v18 = vmul.f32 %v336_v13, %v336_v13  ;;  %v45_v9 = vmul.u32 16, %v1318_v5 }
  0x90   :  { %vm52_vm5 = vcmp.ge.s32.totalorder %v48_v10, 16  ;;  %vm64_vm7 = vcmp.lt.s32.totalorder %v48_v10, 0 }
  0x91   :  { %v342_v16 = vadd.f32 %v341_v14, %v336_v13  ;;  %v350_v19 = vadd.f32 %v349_v17, %v347_v15 }
  0x93   :  { %343 = vadd.xlane.f32.xlu0 %v342_v16  ;;  %v351_v20 = vadd.f32 %v350_v19, %v348_v18  ;;  %v56_v16 = vsel %vm52_vm5, 1, %v1383_v24 }
  0x94   :  { %v60_v17 = vadd.s32 %v1316_v3, %v56_v16 }
  0x9b   :  { %352 = vadd.xlane.f32.xlu0 %v351_v20  ;;  %v68_v20 = vsel %vm64_vm7, 1, %v1383_v24 }
 0x106   :  { %v344_v21 = vpop.xlane.xlu0 %343 }
 0x107   :  { %v354_v22 = vmul.f32 0.001953125, %v344_v21 }
 0x109   :  { %v356_v25 = vmul.f32 %v354_v22, %v354_v22 }
 0x10e   :  { %v353_v23 = vpop.xlane.xlu0 %352 }
 0x10f   :  { %v355_v26 = vmul.f32 0.001953125, %v353_v23 }
 0x111   :  { %v357_v27 = vsub.f32 %v355_v26, %v356_v25 }
 0x113   :  { %v358_v28 = vmax.f32 %v357_v27, 0.0 }
 0x115   :  { %v359_v29 = vadd.f32 1e-05, %v358_v28 }
 0x117   :  { %1347 = vrsqrt.f32 %v359_v29  ;;  %vm366_vm3 = vweird.f32 %v359_v29 }
 0x11d   :  { %v1348_v30 = vpop.eup %1347 }
 0x11e   :  { %v361_v31 = vmul.f32 %v1348_v30, %v359_v29  ;;  %vm367_vm2 = vweird.f32 %v1348_v30 }
 0x11f   :  { %vm368_vm4 = vmor %vm366_vm3, %vm367_vm2 }
 0x120   :  { %v362_v32 = vmul.f32 %v1348_v30, %v361_v31 }
 0x122   :  { %v363_v33 = vmul.f32 0.5, %v362_v32 }
 0x124   :  { %v364_v34 = vsub.f32 1.5, %v363_v33 }
 0x126   :  { %v365_v36 = vmul.f32 %v1348_v30, %v364_v34 }
 0x128   :  { %v369_v37 = vsel %vm368_vm4, %v1348_v30, %v365_v36 }
 0x129   :  { %v370_v38 = vmul.f32 %v369_v37, %v339_v35 }
 0x12b   :  { %v371_v39 = vmul.f32 %v370_v38, %v354_v22  ;;  %v1518_v22 = vsub.s32 %v60_v17, %v68_v20 }
 0x12d   :  { %373 = vrot.lane.b32.xlu1 %v371_v39, %s1384_s24  ;;  %v84_v29 = vcvt.s32.f32 %v1518_v22  ;;  %v76_v20 = vmul.u32 16, %v1518_v22 }
 0x12f   :  { %v88_v36 = vmul.f32 0.0625, %v84_v29  ;;  %v1571_v29 = vsub.s32 %v1487_v59, %v76_v20 }
 0x131   :  { %vm144_vm5 = vcmp.le.s32.totalorder %v1571_v29, 14 }
 0x135   :  { %379 = vperm.xlu1 %1339, %v370_v38  }
 0x19f   :  { %v374_v41 = vpop.permute.xlu1 %373 }
 0x1a0   :  { %v376_v42 = vsub.f32 %v339_v35, %v374_v41 }
 0x1a2   :  { %388 = vperm.xlu2 %1340, %v376_v42  }
 0x1a7   :  { %v380_v43 = vpop.permute.xlu1 %379 }
 0x1a8   :  { %v384_v44 = vmul.f32 %v380_v43, %v316_v12  ;;  %v385_v45 = vmul.f32 %v380_v43, %v336_v13  ;;  %v382_v51 = vmul.f32 %v380_v43, %v276_v7  ;;  %v383_v52 = vmul.f32 %v380_v43, %v296_v8 }
 0x1a9   :  { %v26_v7 = vcvt.s32.f32 %v1480_v58  ;;  %v27_v8 = vcvt.s32.f32 %v1501_v4  ;;  %v49_v13 = vsub.s32 %v1492_v60, %v45_v9 }
 0x1aa   :  { %1341 = vset.pattern.permute.xlu2 %v1383_v24 }
 0x1ab   :  { %v30_v11 = vmul.f32 0.0625, %v26_v7  ;;  %v31_v12 = vmul.f32 0.0625, %v27_v8  ;;  %vm53_vm6 = vcmp.ge.s32.totalorder %v49_v13, 16  ;;  %vm65_vm8 = vcmp.lt.s32.totalorder %v49_v13, 0 }
 0x1ac   :  { %v57_v21 = vsel %vm53_vm6, 1, %v1383_v24  ;;  %v69_v30 = vsel %vm65_vm8, 1, %v1383_v24  ;;  %vm2196_vm8 = vcmp.lt.s32.totalorder %v1480_v58, 111 }
 0x1ad   :  { %v34_v14 = vfloor.f32 %v30_v11  ;;  %v35_v15 = vfloor.f32 %v31_v12  ;;  %v61_v28 = vadd.s32 %v1318_v5, %v57_v21 }
 0x1af   :  { %v1312_v18 = vcvt.f32.s32 %v34_v14  ;;  %v1314_v19 = vcvt.f32.s32 %v35_v15  ;;  %v1530_v35 = vsub.s32 %v61_v28, %v69_v30 }
 0x1b1   :  { %v42_v23 = vmul.u32 16, %v1312_v18  ;;  %v43_v25 = vmul.u32 16, %v1314_v19  ;;  %v85_v43 = vcvt.s32.f32 %v1530_v35 }
 0x1b3   :  { %v46_v26 = vsub.s32 %v1480_v58, %v42_v23  ;;  %v47_v27 = vsub.s32 %v1501_v4, %v43_v25 }
 0x1b5   :  { %vm50_vm9 = vcmp.ge.s32.totalorder %v46_v26, 16  ;;  %vm51_vm10 = vcmp.ge.s32.totalorder %v47_v27, 16  ;;  %vm62_vm11 = vcmp.lt.s32.totalorder %v46_v26, 0  ;;  %vm63_vm12 = vcmp.lt.s32.totalorder %v47_v27, 0 }
 0x1b6   :  { %v54_v31 = vsel %vm50_vm9, 1, %v1383_v24  ;;  %v55_v32 = vsel %vm51_vm10, 1, %v1383_v24  ;;  %v66_v37 = vsel %vm62_vm11, 1, %v1383_v24  ;;  %v67_v39 = vsel %vm63_vm12, 1, %v1383_v24 }
 0x1b7   :  { %v58_v33 = vadd.s32 %v1312_v18, %v54_v31  ;;  %v59_v34 = vadd.s32 %v1314_v19, %v55_v32  ;;  %v77_v32 = vmul.u32 16, %v1530_v35  ;;  %vm509_vm9 = vcmp.lt.s32.totalorder %v1480_v58, 112 }
 0x1b9   :  { %v1535_v38 = vsub.s32 %v58_v33, %v66_v37  ;;  %v1538_v41 = vsub.s32 %v59_v34, %v67_v39 }
 0x1bb   :  { %v82_v42 = vcvt.s32.f32 %v1535_v38  ;;  %v74_v33 = vmul.u32 16, %v1535_v38  ;;  %v75_v39 = vmul.u32 16, %v1538_v41 }
 0x1fc   :  { %v389_v46 = vpop.permute.xlu2 %388 }
 0x1fd   :  { %v393_v47 = vadd.f32 %v389_v46, %v384_v44  ;;  %v394_v48 = vadd.f32 %v389_v46, %v385_v45  ;;  %v391_v53 = vadd.f32 %v389_v46, %v382_v51  ;;  %v392_v54 = vadd.f32 %v389_v46, %v383_v52 }
 0x1fe   :  { %v92_v44 = vfloor.f32 %v88_v36  ;;  %v83_v45 = vcvt.s32.f32 %v1538_v41  ;;  %v86_v46 = vmul.f32 0.0625, %v82_v42  ;;  %v1584_v42 = vsub.s32 %v1492_v60, %v77_v32 }
 0x1ff   :  { %v1442_v49 = vmax.f32 %v393_v47, 0.0  ;;  %v1444_v50 = vmax.f32 %v394_v48, 0.0  ;;  %v1452_v55 = vmax.f32 %v391_v53, 0.0  ;;  %v1454_v56 = vmax.f32 %v392_v54, 0.0 }
 0x200   :  { %v89_v47 = vmul.f32 0.0625, %v85_v43  ;;  %v1324_v48 = vcvt.f32.s32 %v92_v44  ;;  %v87_v51 = vmul.f32 0.0625, %v83_v45  ;;  %v90_v52 = vfloor.f32 %v86_v46 }
 0x201   :  { %524 = vrot.lane.b32.xlu0 %v1444_v50, %s1386_s25  ;;  %505 = vrot.lane.b32.xlu1 %v1442_v49, %s1387_s26  ;;  %v1600_v45 = vsub.s32 %v1501_v4, %v75_v39  ;;  %v1393_v46 = vmov 0.0   ;;  %vm145_vm10 = vcmp.le.s32.totalorder %v1584_v42, 14 }
 0x202   :  { %522 = vrot.lane.b32.xlu2 %v1442_v49, %s1386_s25  ;;  %v93_v53 = vfloor.f32 %v89_v47  ;;  %v100_v54 = vmul.u32 16, %v1324_v48  ;;  %v91_v57 = vfloor.f32 %v87_v51  ;;  %v1320_v61 = vcvt.f32.s32 %v90_v52 }
 0x204   :  { %v1326_v62 = vcvt.f32.s32 %v93_v53  ;;  %v104_v63 = vsub.s32 %v1518_v22, %v100_v54  ;;  %v1322_v0 = vcvt.f32.s32 %v91_v57  ;;  %v98_v1 = vmul.u32 16, %v1320_v61 }
 0x206   :  { %v101_v2 = vmul.u32 16, %v1326_v62  ;;  %vm108_vm13 = vcmp.ge.s32.totalorder %v104_v63, 16  ;;  %v99_v3 = vmul.u32 16, %v1322_v0  ;;  %v102_v6 = vsub.s32 %v1535_v38, %v98_v1 }
 0x207   :  { %v112_v5 = vsel %vm108_vm13, 1, %v1383_v24  ;;  %vm120_vm14 = vcmp.lt.s32.totalorder %v104_v63, 0 }
 0x208   :  { %v105_v7 = vsub.s32 %v1530_v35, %v101_v2  ;;  %v103_v8 = vsub.s32 %v1538_v41, %v99_v3  ;;  %v116_v10 = vadd.s32 %v1324_v48, %v112_v5  ;;  %v124_v11 = vsel %vm120_vm14, 1, %v1383_v24 }
 0x209   :  { %520 = vrot.lane.b32.xlu0 %v1454_v56, %s1386_s25  ;;  %518 = vrot.lane.b32.xlu1 %v1452_v55, %s1386_s25  ;;  %vm106_vm15 = vcmp.ge.s32.totalorder %v102_v6, 16  ;;  %vm118_vm3 = vcmp.lt.s32.totalorder %v102_v6, 0  ;;  %vm143_vm14 = vcmp.le.s32.totalorder %v1600_v45, 14 }
 0x20a   :  { %507 = vrot.lane.b32.xlu2 %v1444_v50, %s1387_s26  ;;  %vm109_vm0 = vcmp.ge.s32.totalorder %v105_v7, 16  ;;  %vm107_vm1 = vcmp.ge.s32.totalorder %v103_v8, 16  ;;  %v128_v12 = vsub.s32 %v116_v10, %v124_v11  ;;  %v110_v13 = vsel %vm106_vm15, 1, %v1383_v24 }
 0x20b   :  { %v113_v14 = vsel %vm109_vm0, 1, %v1383_v24  ;;  %vm121_vm2 = vcmp.lt.s32.totalorder %v105_v7, 0  ;;  %v111_v15 = vsel %vm107_vm1, 1, %v1383_v24  ;;  %vm119_vm4 = vcmp.lt.s32.totalorder %v103_v8, 0 }
 0x20c   :  { %v114_v16 = vadd.s32 %v1320_v61, %v110_v13  ;;  %v117_v17 = vadd.s32 %v1326_v62, %v113_v14  ;;  %v125_v18 = vsel %vm121_vm2, 1, %v1383_v24  ;;  %v132_v21 = vmul.u32 16, %v128_v12 }
 0x20d   :  { %v122_v23 = vsel %vm118_vm3, 1, %v1383_v24  ;;  %v115_v25 = vadd.s32 %v1322_v0, %v111_v15  ;;  %v123_v26 = vsel %vm119_vm4, 1, %v1383_v24  ;;  %vm140_vm3 = vcmp.ge.s32.totalorder %v1571_v29, 1 }
 0x20e   :  { %v126_v27 = vsub.s32 %v114_v16, %v122_v23  ;;  %v129_v28 = vsub.s32 %v117_v17, %v125_v18  ;;  %v1574_v30 = vsub.s32 %v1518_v22, %v132_v21  ;;  %v1591_v22 = vsub.s32 %v1480_v58, %v74_v33 }
 0x20f   :  { %v127_v31 = vsub.s32 %v115_v25, %v123_v26  ;;  %vm141_vm4 = vcmp.ge.s32.totalorder %v1584_v42, 1  ;;  %v1701_v18 = vsel %vm145_vm10, 1.0, %v1393_v46  ;;  %v1711_v25 = vsel %vm144_vm5, 1.0, %v1393_v46 }
 0x210   :  { %v130_v34 = vmul.u32 16, %v126_v27  ;;  %v133_v36 = vmul.u32 16, %v129_v28  ;;  %vm152_vm6 = vcmp.le.s32.totalorder %v1574_v30, 14  ;;  %vm142_vm11 = vcmp.le.s32.totalorder %v1591_v22, 14 }
 0x211   :  { %484 = vrot.lane.b32.xlu0 %v1452_v55, %s1388_s27  ;;  %490 = vrot.lane.b32.xlu1 %v1444_v50, %s1388_s27  ;;  %v131_v59 = vmul.u32 16, %v127_v31  ;;  %vm224_vm7 = vmand %vm152_vm6, %vm144_vm5  ;;  %v1616_v4 = vsel %vm152_vm6, 1.0, %v1393_v46 }
 0x212   :  { %488 = vrot.lane.b32.xlu2 %v1442_v49, %s1388_s27  ;;  %v1594_v43 = vsub.s32 %v1535_v38, %v130_v34  ;;  %v1597_v44 = vsub.s32 %v1530_v35, %v133_v36  ;;  %v1608_v47 = vsel %vm224_vm7, 1.0, %v1393_v46  ;;  %vm204_vm7 = vmand %vm152_vm6, %vm140_vm3  ;;  %vm138_vm6 = vcmp.ge.s32.totalorder %v1591_v22, 1 }
 0x213   :  { %v1603_v60 = vsub.s32 %v1538_v41, %v131_v59  ;;  %v1688_v11 = vsel %vm204_vm7, 1.0, %v1393_v46 }
 0x214   :  { %vm150_vm12 = vcmp.le.s32.totalorder %v1594_v43, 14  ;;  %vm153_vm13 = vcmp.le.s32.totalorder %v1597_v44, 14 }
 0x215   :  { %vm151_vm15 = vcmp.le.s32.totalorder %v1603_v60, 14  ;;  %vm225_vm0 = vmand %vm153_vm13, %vm145_vm10  ;;  %v1658_v0 = vsel %vm153_vm13, 1.0, %v1393_v46 }
 0x216   :  { %vm222_vm1 = vmand %vm150_vm12, %vm142_vm11  ;;  %v1653_v61 = vsel %vm225_vm0, 1.0, %v1393_v46  ;;  %v1736_v33 = vsel %vm151_vm15, 1.0, %v1393_v46 }
 0x217   :  { %vm223_vm2 = vmand %vm151_vm15, %vm143_vm14  ;;  %v1647_v54 = vsel %vm222_vm1, 1.0, %v1393_v46  ;;  %vm2194_vm1 = vcmp.lt.s32.totalorder %v1480_v58, 113 }
 0x218   :  { %v1650_v57 = vsel %vm223_vm2, 1.0, %v1393_v46  ;;  %vm205_vm0 = vmand %vm153_vm13, %vm141_vm4  ;;  %vm2195_vm2 = vcmp.lt.s32.totalorder %v1480_v58, 127  ;;  %vm139_vm13 = vcmp.ge.s32.totalorder %v1600_v45, 1 }
 0x219   :  { %486 = vrot.lane.b32.xlu0 %v1454_v56, %s1388_s27  ;;  %471 = vrot.lane.b32.xlu1 %v1442_v49, %s1389_s28  ;;  %v1691_v12 = vsel %vm205_vm0, 1.0, %v1393_v46  ;;  %vm202_vm7 = vmand %vm150_vm12, %vm138_vm6 }
 0x21a   :  { %501 = vrot.lane.b32.xlu2 %v1452_v55, %s1387_s26  ;;  %vm203_vm0 = vmand %vm151_vm15, %vm139_vm13  ;;  %v1739_v39 = vsel %vm202_vm7, 1.0, %v1393_v46  ;;  %vm148_vm15 = vcmp.ge.s32.totalorder %v1574_v30, 1  ;;  %vm149_vm7 = vcmp.ge.s32.totalorder %v1597_v44, 1 }
 0x21b   :  { %v1742_v59 = vsel %vm203_vm0, 1.0, %v1393_v46  ;;  %vm176_vm0 = vmand %vm148_vm15, %vm144_vm5  ;;  %vm407_vm5 = vcmp.lt.s32.totalorder %v1480_v58, 17 }
 0x221   :  { %469 = vrot.lane.b32.xlu0 %v1454_v56, %s1389_s28  ;;  %503 = vrot.lane.b32.xlu1 %v1454_v56, %s1387_s26 }
 0x222   :  { %473 = vrot.lane.b32.xlu2 %v1444_v50, %s1389_s28 }
 0x229   :  { %456 = vrot.lane.b32.xlu0 %v1444_v50, %s1384_s24  ;;  %452 = vrot.lane.b32.xlu1 %v1454_v56, %s1384_s24 }
 0x22a   :  { %467 = vrot.lane.b32.xlu2 %v1452_v55, %s1389_s28 }
 0x231   :  { %439 = vrot.lane.b32.xlu0 %v1444_v50, %s1390_s29  ;;  %435 = vrot.lane.b32.xlu1 %v1454_v56, %s1390_s29 }
 0x232   :  { %454 = vrot.lane.b32.xlu2 %v1442_v49, %s1384_s24 }
 0x239   :  { %403 = vrot.lane.b32.xlu0 %v1442_v49, %s1391_s30  ;;  %418 = vrot.lane.b32.xlu1 %v1454_v56, %s1392_s6 }
 0x23a   :  { %437 = vrot.lane.b32.xlu2 %v1442_v49, %s1390_s29 }
 0x241   :  { %405 = vrot.lane.b32.xlu0 %v1444_v50, %s1391_s30  ;;  %450 = vrot.lane.b32.xlu1 %v1452_v55, %s1384_s24 }
 0x242   :  { %420 = vrot.lane.b32.xlu2 %v1442_v49, %s1392_s6 }
 0x249   :  { %422 = vrot.lane.b32.xlu1 %v1444_v50, %s1392_s6 }
 0x24a   :  { %401 = vrot.lane.b32.xlu2 %v1454_v56, %s1391_s30 }
 0x251   :  { %416 = vrot.lane.b32.xlu1 %v1452_v55, %s1392_s6 }
 0x252   :  { %433 = vrot.lane.b32.xlu2 %v1452_v55, %s1390_s29 }
 0x25a   :  { %399 = vrot.lane.b32.xlu2 %v1452_v55, %s1391_s30 }
 0x25c   :  { %v1558_v9 = vpop.permute.xlu2 %522 }
 0x264   :  { %v1565_v19 = vpop.permute.xlu2 %507 }
 0x26c   :  { %v1578_v37 = vpop.permute.xlu2 %488 }
 0x273   :  { %v525_v38 = vpop.permute.xlu0 %524  ;;  %v1611_v48 = vpop.permute.xlu1 %505 }
 0x274   :  { %v527_v35 = vsel %vm2196_vm8, %v1558_v9, %v525_v38  ;;  %v510_v41 = vsel %vm509_vm9, %v1611_v48, %v1565_v19  ;;  %v1628_v51 = vpop.permute.xlu2 %501 }
 0x275   :  { %v533_v52 = vmul.f32 %v1608_v47, %v527_v35  ;;  %v516_v53 = vmul.f32 %v1616_v4, %v510_v41  ;;  %v513_v6 = vsel %vm509_vm9, %v1565_v19, %v1628_v51 }
 0x276   :  { %v517_v10 = vmul.f32 %v1658_v0, %v513_v6  ;;  %v1779_v6 = vsel %vm140_vm3, 1.0, %v1393_v46 }
 0x277   :  { %587 = vmatpush.msrb.mxu2 %v533_v52 }
 0x279   :  { %588 = vmatpush.msrb.mxu2 %v516_v53 }
 0x27b   :  { %v521_v62 = vpop.permute.xlu0 %520  ;;  %v519_v63 = vpop.permute.xlu1 %518 }
 0x27c   :  { %v528_v1 = vsel %vm2196_vm8, %v521_v62, %v1558_v9  ;;  %v474_v2 = vpop.permute.xlu2 %473  ;;  %v529_v3 = vsel %vm2196_vm8, %v519_v63, %v521_v62  ;;  %v530_v5 = vsel %vm2196_vm8, %v525_v38, %v519_v63 }
 0x27d   :  { %v531_v7 = vmul.f32 %v1647_v54, %v529_v3  ;;  %v532_v8 = vmul.f32 %v1650_v57, %v528_v1  ;;  %v534_v9 = vmul.f32 %v1653_v61, %v530_v5  ;;  %v1764_v1 = vsel %vm142_vm11, 1.0, %v1393_v46 }
 0x27f   :  { %547 = vmatpush.msrb.mxu0 %v531_v7  ;;  %567 = vmatpush.msrb.mxu1 %v532_v8  ;;  %v1784_v7 = vsel %vm141_vm4, 1.0, %v1393_v46 }
 0x280   :  { %607 = vmatpush.msrb.mxu3 %v534_v9 }
 0x282   :  { %608 = vmatpush.msrb.mxu3 %v517_v10 }
 0x283   :  { %v485_v13 = vpop.permute.xlu0 %484  ;;  %v491_v14 = vpop.permute.xlu1 %490 }
 0x284   :  { %v468_v15 = vpop.permute.xlu2 %467  ;;  %v493_v16 = vsel %vm2194_vm1, %v1578_v37, %v491_v14  ;;  %v496_v17 = vsel %vm2194_vm1, %v491_v14, %v485_v13 }
 0x285   :  { %v479_v19 = vsel %vm2195_vm2, %v474_v2, %v468_v15  ;;  %v499_v20 = vmul.f32 %v1688_v11, %v493_v16  ;;  %v500_v21 = vmul.f32 %v1691_v12, %v496_v17 }
 0x286   :  { %v483_v23 = vmul.f32 %v1701_v18, %v479_v19 }
 0x287   :  { %589 = vmatpush.msrb.mxu2 %v499_v20  ;;  %609 = vmatpush.msrb.mxu3 %v500_v21 }
 0x289   :  { %610 = vmatpush.msrb.mxu3 %v483_v23 }
 0x28b   :  { %v487_v26 = vpop.permute.xlu0 %486  ;;  %v472_v27 = vpop.permute.xlu1 %471  ;;  %611 = vmatpush.msrb.mxu3 %v1444_v50  ;;  %v1731_v50 = vsel %vm150_vm12, 1.0, %v1393_v46  ;;  %vm458_vm12 = vcmp.lt.s32.totalorder %v1480_v58, 1 }
 0x28c   :  { %v455_v28 = vpop.permute.xlu2 %454  ;;  %v476_v31 = vsel %vm2195_vm2, %v472_v27, %v474_v2  ;;  %v495_v38 = vsel %vm2194_vm1, %v485_v13, %v487_v26 }
 0x28d   :  { %v482_v32 = vmul.f32 %v1711_v25, %v476_v31 }
 0x28f   :  { %590 = vmatpush.msrb.mxu2 %v482_v32 }
 0x291   :  { %591 = vmatpush.msrb.mxu2 %v1442_v49  ;;  %v494_v49 = vsel %vm2194_vm1, %v487_v26, %v1578_v37  ;;  %vm177_vm1 = vmand %vm149_vm7, %vm145_vm10  ;;  %vm424_vm10 = vcmp.lt.s32.totalorder %v1480_v58, 16 }
 0x292   :  { %v498_v2 = vmul.f32 %v1742_v59, %v494_v49 }
 0x293   :  { %v470_v34 = vpop.permute.xlu0 %469  ;;  %v504_v36 = vpop.permute.xlu1 %503 }
 0x294   :  { %v438_v35 = vpop.permute.xlu2 %437  ;;  %v511_v41 = vsel %vm509_vm9, %v504_v36, %v1611_v48  ;;  %v512_v52 = vsel %vm509_vm9, %v1628_v51, %v504_v36  ;;  %v477_v63 = vsel %vm2195_vm2, %v470_v34, %v472_v27  ;;  %v478_v37 = vsel %vm2195_vm2, %v468_v15, %v470_v34 }
 0x295   :  { %v514_v53 = vmul.f32 %v1731_v50, %v512_v52  ;;  %v515_v62 = vmul.f32 %v1736_v33, %v511_v41  ;;  %v1769_v48 = vsel %vm143_vm14, 1.0, %v1393_v46  ;;  %v497_v51 = vmul.f32 %v1739_v39, %v495_v38  ;;  %v1849_v38 = vld [vmem:[%s2190_s2] sm:$0xff] }
 0x296   :  { %v480_v3 = vmul.f32 %v1764_v1, %v478_v37  ;;  %v481_v5 = vmul.f32 %v1769_v48, %v477_v63  ;;  %vm441_vm2 = vcmp.lt.s32.totalorder %v1480_v58, 15  ;;  %v1858_v41 = vsel %vm138_vm6, 1.0, %v1393_v46 }
 0x297   :  { %548 = vmatpush.msrb.mxu0 %v514_v53  ;;  %568 = vmatpush.msrb.mxu1 %v515_v62  ;;  %v1863_v52 = vsel %vm139_vm13, 1.0, %v1393_v46 }
 0x299   :  { %549 = vmatpush.msrb.mxu0 %v497_v51  ;;  %569 = vmatpush.msrb.mxu1 %v498_v2 }
 0x29b   :  { %v457_v8 = vpop.permute.xlu0 %456  ;;  %v453_v9 = vpop.permute.xlu1 %452  ;;  %550 = vmatpush.msrb.mxu0 %v480_v3  ;;  %570 = vmatpush.msrb.mxu1 %v481_v5 }
 0x29c   :  { %v459_v10 = vsel %vm458_vm12, %v455_v28, %v457_v8  ;;  %v460_v13 = vsel %vm458_vm12, %v453_v9, %v455_v28  ;;  %v1792_v14 = vpop.permute.xlu2 %420  ;;  %v1828_v28 = vsel %vm148_vm15, 1.0, %v1393_v46 }
 0x29d   :  { %551 = vmatpush.msrb.mxu0 %v1452_v55  ;;  %571 = vmatpush.msrb.mxu1 %v1454_v56  ;;  %v465_v15 = vmul.f32 %v1779_v6, %v460_v13  ;;  %v466_v16 = vmul.f32 %v1784_v7, %v459_v10  ;;  %v1808_v55 = vsel %vm176_vm0, 1.0, %v1393_v46  ;;  %v1811_v56 = vsel %vm177_vm1, 1.0, %v1393_v46  ;;  %vm156_vm1 = vmand %vm148_vm15, %vm140_vm3 }
 0x29e   :  { %v1836_v49 = vsel %vm156_vm1, 1.0, %v1393_v46  ;;  %vm146_vm0 = vcmp.ge.s32.totalorder %v1594_v43, 1  ;;  %vm147_vm3 = vcmp.ge.s32.totalorder %v1603_v60, 1  ;;  %vm536_vm1 = vcmask 588800  }
 0x29f   :  { %592 = vmatpush.msrb.mxu2 %v465_v15  ;;  %612 = vmatpush.msrb.mxu3 %v466_v16  ;;  %vm174_vm15 = vmand %vm146_vm0, %vm142_vm11 }
 0x2a0   :  { %vm175_vm8 = vmand %vm147_vm3, %vm143_vm14  ;;  %v1868_v62 = vsel %vm174_vm15, 1.0, %v1393_v46 }
 0x2a1   :  { %v1871_v63 = vsel %vm175_vm8, 1.0, %v1393_v46  ;;  %vm157_vm8 = vmand %vm149_vm7, %vm141_vm4 }
 0x2a2   :  { %vm154_vm11 = vmand %vm146_vm0, %vm138_vm6 }
 0x2a3   :  { %v440_v17 = vpop.permute.xlu0 %439  ;;  %v436_v19 = vpop.permute.xlu1 %435  ;;  %vm155_vm14 = vmand %vm147_vm3, %vm139_vm13  ;;  %v1925_v45 = vsel %vm154_vm11, 1.0, %v1393_v46 }
 0x2a4   :  { %v442_v20 = vsel %vm441_vm2, %v438_v35, %v440_v17  ;;  %v443_v21 = vsel %vm441_vm2, %v436_v19, %v438_v35  ;;  %v402_v27 = vpop.permute.xlu2 %401 }
 0x2a5   :  { %v448_v23 = vmul.f32 %v1808_v55, %v443_v21  ;;  %v449_v26 = vmul.f32 %v1811_v56, %v442_v20  ;;  %v1900_v20 = vsel %vm157_vm8, 1.0, %v1393_v46  ;;  %vm2197_vm8 = vcmp.lt.s32.totalorder %v1480_v58, 111 }
 0x2a6   :  { %vm2198_vm11 = vmmov %vm2197_vm8 }
 0x2a7   :  { %593 = vmatpush.msrb.mxu2 %v448_v23  ;;  %613 = vmatpush.msrb.mxu3 %v449_v26  ;;  %v1920_v23 = vsel %vm147_vm3, 1.0, %v1393_v46  ;;  %v1928_v26 = vsel %vm155_vm14, 1.0, %v1393_v46  ;;  %vm2199_vm14 = vcmp.lt.s32.totalorder %v1480_v58, 127 }
 0x2ab   :  { %v404_v31 = vpop.permute.xlu0 %403  ;;  %v419_v32 = vpop.permute.xlu1 %418 }
 0x2ac   :  { %v409_v34 = vsel %vm407_vm5, %v402_v27, %v404_v31  ;;  %v426_v36 = vsel %vm424_vm10, %v419_v32, %v1792_v14  ;;  %v434_v35 = vpop.permute.xlu2 %433 }
 0x2ad   :  { %v431_v29 = vmul.f32 %v1828_v28, %v426_v36  ;;  %v414_v30 = vmul.f32 %v1836_v49, %v409_v34  ;;  %v444_v37 = vsel %vm441_vm2, %v434_v35, %v436_v19  ;;  %v445_v51 = vsel %vm441_vm2, %v440_v17, %v434_v35 }
 0x2ae   :  { %v446_v13 = vmul.f32 %v1868_v62, %v445_v51  ;;  %v447_v15 = vmul.f32 %v1871_v63, %v444_v37 }
 0x2af   :  { %594 = vmatpush.msrb.mxu2 %v431_v29 }
 0x2b1   :  { %595 = vmatpush.msrb.mxu2 %v414_v30 }
 0x2b2   :  { %1295 = vmatmul.msk.f32.vlgmr.msrb.gmra.mxu2 %vm536_vm1, %v1849_v38 }
 0x2b3   :  { %v451_v53 = vpop.permute.xlu1 %450  ;;  %v406_v16 = vpop.permute.xlu0 %405 }
 0x2b4   :  { %v461_v2 = vsel %vm458_vm12, %v451_v53, %v453_v9  ;;  %v462_v3 = vsel %vm458_vm12, %v457_v8, %v451_v53  ;;  %v1892_v8 = vsel %vm149_vm7, 1.0, %v1393_v46  ;;  %v408_v17 = vsel %vm407_vm5, %v404_v31, %v406_v16  ;;  %v400_v44 = vpop.permute.xlu2 %399 }
 0x2b5   :  { %v463_v5 = vmul.f32 %v1858_v41, %v462_v3  ;;  %v464_v10 = vmul.f32 %v1863_v52, %v461_v2  ;;  %v415_v21 = vmul.f32 %v1900_v20, %v408_v17  ;;  %v410_v43 = vsel %vm407_vm5, %v400_v44, %v402_v27 }
 0x2b6   :  { %v411_v31 = vsel %vm407_vm5, %v406_v16, %v400_v44  ;;  %v413_v30 = vmul.f32 %v1928_v26, %v410_v43  ;;  %vm682_vm7 = vcmask 64512  }
 0x2b7   :  { %552 = vmatpush.msrb.mxu0 %v463_v5  ;;  %572 = vmatpush.msrb.mxu1 %v464_v10 }
 0x2b9   :  { %553 = vmatpush.msrb.mxu0 %v446_v13  ;;  %573 = vmatpush.msrb.mxu1 %v447_v15 }
 0x2bb   :  { %v423_v9 = vpop.permute.xlu1 %422 }
 0x2bc   :  { %v425_v19 = vsel %vm424_vm10, %v1792_v14, %v423_v9  ;;  %v1915_v14 = vsel %vm146_vm0, 1.0, %v1393_v46  ;;  %v412_v46 = vmul.f32 %v1925_v45, %v411_v31 }
 0x2bd   :  { %v432_v42 = vmul.f32 %v1892_v8, %v425_v19 }
 0x2bf   :  { %614 = vmatpush.msrb.mxu3 %v432_v42 }
 0x2c1   :  { %615 = vmatpush.msrb.mxu3 %v415_v21 }
 0x2c2   :  { %1296 = vmatmul.msk.f32.vlgmr.msrb.gmra.mxu3 %vm536_vm1, %v1849_v38 }
 0x2c3   :  { %v417_v22 = vpop.permute.xlu1 %416 }
 0x2c4   :  { %v427_v60 = vsel %vm424_vm10, %v417_v22, %v419_v32  ;;  %v428_v34 = vsel %vm424_vm10, %v423_v9, %v417_v22 }
 0x2c5   :  { %v429_v36 = vmul.f32 %v1915_v14, %v428_v34  ;;  %v430_v29 = vmul.f32 %v1920_v23, %v427_v60 }
 0x2c7   :  { %554 = vmatpush.msrb.mxu0 %v429_v36  ;;  %574 = vmatpush.msrb.mxu1 %v430_v29 }
 0x2c9   :  { %555 = vmatpush.msrb.mxu0 %v412_v46  ;;  %575 = vmatpush.msrb.mxu1 %v413_v30  ;;  %v1949_v30 = vld [vmem:[%s2192_s4 + $0x8] sm:$0xff] }
 0x2ca   :  { %1293 = vmatmul.msk.f32.vlgmr.msrb.gmra.mxu0 %vm536_vm1, %v1849_v38  ;;  %1294 = vmatmul.msk.f32.vlgmr.msrb.gmra.mxu1 %vm536_vm1, %v1849_v38 }
 0x335   :  { %v597_v27 = vpop.f32.mrf.mxu2 }
 0x336   :  { %v629_v3 = vmul.f32 %v597_v27, %v597_v27 }
 0x345   :  { %v617_v32 = vpop.f32.mrf.mxu3 }
 0x346   :  { %v630_v10 = vmul.f32 %v617_v32, %v617_v32 }
 0x347   :  { %v557_v35 = vpop.f32.mrf.mxu0  ;;  %v577_v53 = vpop.f32.mrf.mxu1 }
 0x348   :  { %v627_v37 = vmul.f32 %v557_v35, %v557_v35  ;;  %v622_v51 = vadd.f32 %v577_v53, %v557_v35  ;;  %v628_v2 = vmul.f32 %v577_v53, %v577_v53 }
 0x34a   :  { %v623_v5 = vadd.f32 %v622_v51, %v597_v27  ;;  %v631_v13 = vadd.f32 %v628_v2, %v627_v37 }
 0x34c   :  { %v624_v15 = vadd.f32 %v623_v5, %v617_v32  ;;  %v632_v16 = vadd.f32 %v631_v13, %v629_v3 }
 0x34e   :  { %625 = vadd.xlane.f32.xlu0 %v624_v15  ;;  %v633_v9 = vadd.f32 %v632_v16, %v630_v10 }
 0x350   :  { %634 = vadd.xlane.f32.xlu1 %v633_v9 }
 0x3c1   :  { %v626_v17 = vpop.xlane.xlu0 %625 }
 0x3c2   :  { %v636_v19 = vmul.f32 0.001953125, %v626_v17 }
 0x3c3   :  { %v635_v42 = vpop.xlane.xlu1 %634 }
 0x3c4   :  { %v638_v21 = vmul.f32 %v636_v19, %v636_v19  ;;  %v637_v44 = vmul.f32 0.001953125, %v635_v42 }
 0x3c6   :  { %v639_v22 = vsub.f32 %v637_v44, %v638_v21 }
 0x3c8   :  { %v640_v43 = vmax.f32 %v639_v22, 0.0 }
 0x3ca   :  { %v641_v31 = vadd.f32 1e-05, %v640_v43 }
 0x3cc   :  { %1349 = vrsqrt.f32 %v641_v31  ;;  %vm648_vm6 = vweird.f32 %v641_v31 }
 0x3d2   :  { %v1350_v60 = vpop.eup %1349 }
 0x3d3   :  { %v643_v34 = vmul.f32 %v1350_v60, %v641_v31  ;;  %vm649_vm4 = vweird.f32 %v1350_v60 }
 0x3d4   :  { %vm650_vm13 = vmor %vm648_vm6, %vm649_vm4  ;;  %vm2200_vm4 = vcmp.lt.s32.totalorder %v1480_v58, 113 }
 0x3d5   :  { %v644_v36 = vmul.f32 %v1350_v60, %v643_v34  ;;  %vm2201_vm6 = vmmov %vm2197_vm8 }
 0x3d7   :  { %v645_v29 = vmul.f32 0.5, %v644_v36  ;;  %v1958_v36 = vld [vmem:[%s2191_s3] sm:$0xff] }
 0x3d9   :  { %v646_v46 = vsub.f32 1.5, %v645_v29 }
 0x3db   :  { %v647_v37 = vmul.f32 %v1350_v60, %v646_v46 }
 0x3dd   :  { %v651_v51 = vsel %vm650_vm13, %v1350_v60, %v647_v37  ;;  %vm2202_vm13 = vmmov %vm2201_vm6 }
 0x3de   :  { %v652_v2 = vmul.f32 %v1949_v30, %v651_v51 }
 0x3e0   :  { %v653_v3 = vmul.f32 %v652_v2, %v636_v19 }
 0x3e2   :  { %655 = vrot.lane.b32.xlu2 %v653_v3, %s1384_s24 }
 0x3ea   :  { %661 = vperm.xlu2 %1341, %v652_v2  }
 0x3f2   :  { %1342 = vset.pattern.permute.xlu2 %v1385_v40 }
 0x43c   :  { %v656_v5 = vpop.permute.xlu2 %655 }
 0x43d   :  { %v658_v10 = vsub.f32 %v1949_v30, %v656_v5 }
 0x43f   :  { %670 = vperm.xlu2 %1342, %v658_v10  }
 0x444   :  { %v662_v13 = vpop.permute.xlu2 %661 }
 0x445   :  { %v664_v15 = vmul.f32 %v662_v13, %v557_v35  ;;  %v665_v16 = vmul.f32 %v662_v13, %v577_v53  ;;  %v666_v9 = vmul.f32 %v662_v13, %v597_v27  ;;  %v667_v17 = vmul.f32 %v662_v13, %v617_v32 }
 0x499   :  { %v671_v42 = vpop.permute.xlu2 %670 }
 0x49a   :  { %v673_v21 = vadd.f32 %v671_v42, %v664_v15  ;;  %v674_v44 = vadd.f32 %v671_v42, %v665_v16  ;;  %v675_v22 = vadd.f32 %v671_v42, %v666_v9  ;;  %v676_v43 = vadd.f32 %v671_v42, %v667_v17 }
 0x49c   :  { %v677_v19 = vmax.f32 %v673_v21, 0.0  ;;  %v678_v31 = vmax.f32 %v674_v44, 0.0  ;;  %v679_v60 = vmax.f32 %v675_v22, 0.0  ;;  %v680_v34 = vmax.f32 %v676_v43, 0.0 }
 0x49e   :  { %701 = vmatpush.msra.mxu0 %v677_v19  ;;  %721 = vmatpush.msra.mxu1 %v678_v31 }
 0x49f   :  { %741 = vmatpush.msra.mxu2 %v679_v60  ;;  %761 = vmatpush.msra.mxu3 %v680_v34 }
 0x4a0   :  { %1300 = vmatmul.msk.f32.vlgmr.msra.gmra.mxu2 %vm682_vm7, %v1958_v36  ;;  %1301 = vmatmul.msk.f32.vlgmr.msra.gmra.mxu3 %vm682_vm7, %v1958_v36 }
 0x4a1   :  { %1298 = vmatmul.msk.f32.vlgmr.msra.gmra.mxu0 %vm682_vm7, %v1958_v36  ;;  %1299 = vmatmul.msk.f32.vlgmr.msra.gmra.mxu1 %vm682_vm7, %v1958_v36 }
 0x51e   :  { %v703_v27 = vpop.f32.mrf.mxu0  ;;  %v723_v32 = vpop.f32.mrf.mxu1 }
 0x51f   :  { %v773_v35 = vmul.f32 %v703_v27, %v703_v27  ;;  %v774_v53 = vmul.f32 %v723_v32, %v723_v32  ;;  %v768_v29 = vadd.f32 %v723_v32, %v703_v27 }
 0x521   :  { %v777_v46 = vadd.f32 %v774_v53, %v773_v35  ;;  %v1971_v53 = vld [vmem:[%s2192_s4 + $0x10] sm:$0xff]  ;;  %s1394_s4 = smov [#allocation2]  }
 0x522   :  { %s1242_s13 = sshll.u32 %s1394_s4, 4  ;;  %s1243_s13 = int_to_ptr.vmem [resolvable:$true] %s1242_s13 }
 0x523   :  { %v743_v37 = vpop.f32.mrf.mxu2  ;;  %v763_v51 = vpop.f32.mrf.mxu3 }
 0x524   :  { %v775_v2 = vmul.f32 %v743_v37, %v743_v37  ;;  %v769_v3 = vadd.f32 %v768_v29, %v743_v37  ;;  %v776_v5 = vmul.f32 %v763_v51, %v763_v51 }
 0x526   :  { %v770_v10 = vadd.f32 %v769_v3, %v763_v51  ;;  %v778_v13 = vadd.f32 %v777_v46, %v775_v2 }
 0x528   :  { %771 = vadd.xlane.f32.xlu2 %v770_v10  ;;  %v779_v15 = vadd.f32 %v778_v13, %v776_v5 }
 0x52a   :  { %780 = vadd.xlane.f32.xlu0 %v779_v15 }
 0x59b   :  { %v772_v16 = vpop.xlane.xlu2 %771 }
 0x59c   :  { %v782_v9 = vmul.f32 0.001953125, %v772_v16 }
 0x59d   :  { %v781_v17 = vpop.xlane.xlu0 %780 }
 0x59e   :  { %v784_v42 = vmul.f32 %v782_v9, %v782_v9  ;;  %v783_v21 = vmul.f32 0.001953125, %v781_v17 }
 0x5a0   :  { %v785_v44 = vsub.f32 %v783_v21, %v784_v42 }
 0x5a2   :  { %v786_v22 = vmax.f32 %v785_v44, 0.0 }
 0x5a4   :  { %v787_v43 = vadd.f32 1e-05, %v786_v22 }
 0x5a6   :  { %1351 = vrsqrt.f32 %v787_v43  ;;  %vm794_vm3 = vweird.f32 %v787_v43 }
 0x5ac   :  { %v1352_v19 = vpop.eup %1351 }
 0x5ad   :  { %v789_v31 = vmul.f32 %v1352_v19, %v787_v43  ;;  %vm795_vm0 = vweird.f32 %v1352_v19 }
 0x5ae   :  { %vm796_vm15 = vmor %vm794_vm3, %vm795_vm0 }
 0x5af   :  { %v790_v60 = vmul.f32 %v1352_v19, %v789_v31  ;;  %vm2204_vm0 = vmmov %vm2200_vm4 }
 0x5b0   :  { %vm2205_vm3 = vmmov %vm2204_vm0 }
 0x5b1   :  { %v791_v34 = vmul.f32 0.5, %v790_v60 }
 0x5b3   :  { %v792_v35 = vsub.f32 1.5, %v791_v34 }
 0x5b5   :  { %v793_v29 = vmul.f32 %v1352_v19, %v792_v35 }
 0x5b7   :  { %v797_v46 = vsel %vm796_vm15, %v1352_v19, %v793_v29  ;;  %vm2206_vm15 = vmmov %vm2204_vm0 }
 0x5b8   :  { %v798_v2 = vmul.f32 %v1971_v53, %v797_v46 }
 0x5ba   :  { %807 = vperm.xlu0 %1343, %v798_v2   ;;  %v799_v3 = vmul.f32 %v798_v2, %v782_v9 }
 0x5bc   :  { %801 = vrot.lane.b32.xlu1 %v799_v3, %s1384_s24 }
 0x5c2   :  { %1346 = vset.pattern.permute.xlu0 %v1385_v40 }
 0x62c   :  { %v808_v13 = vpop.permute.xlu0 %807 }
 0x62d   :  { %v810_v15 = vmul.f32 %v808_v13, %v703_v27  ;;  %v812_v16 = vmul.f32 %v808_v13, %v743_v37  ;;  %v813_v17 = vmul.f32 %v808_v13, %v763_v51 }
 0x62e   :  { %v802_v5 = vpop.permute.xlu1 %801 }
 0x62f   :  { %v804_v10 = vsub.f32 %v1971_v53, %v802_v5 }
 0x631   :  { %816 = vperm.xlu2 %1342, %v804_v10  }
 0x639   :  { %1344 = vset.pattern.permute.xlu2 %v1383_v24  ;;  %v811_v24 = vmul.f32 %v808_v13, %v723_v32 }
 0x68b   :  { %v817_v42 = vpop.permute.xlu2 %816 }
 0x68c   :  { %v819_v21 = vadd.f32 %v817_v42, %v810_v15  ;;  %v821_v44 = vadd.f32 %v817_v42, %v812_v16  ;;  %v822_v22 = vadd.f32 %v817_v42, %v813_v17  ;;  %v820_v27 = vadd.f32 %v817_v42, %v811_v24 }
 0x68e   :  { %v1978_v43 = vmax.f32 %v819_v21, 0.0  ;;  %v1980_v9 = vmax.f32 %v821_v44, 0.0  ;;  %v1982_v19 = vmax.f32 %v822_v22, 0.0  ;;  %v2002_v37 = vmax.f32 %v820_v27, 0.0 }
 0x690   :  { %929 = vrot.lane.b32.xlu0 %v1982_v19, %s1387_s26  ;;  %943 = vrot.lane.b32.xlu1 %v1980_v9, %s1386_s25 }
 0x691   :  { %939 = vrot.lane.b32.xlu2 %v1978_v43, %s1386_s25 }
 0x698   :  { %913 = vrot.lane.b32.xlu0 %v1982_v19, %s1388_s27  ;;  %945 = vrot.lane.b32.xlu1 %v1982_v19, %s1386_s25 }
 0x699   :  { %923 = vrot.lane.b32.xlu2 %v1978_v43, %s1387_s26 }
 0x6a0   :  { %895 = vrot.lane.b32.xlu0 %v1980_v9, %s1389_s28  ;;  %927 = vrot.lane.b32.xlu1 %v1980_v9, %s1387_s26 }
 0x6a1   :  { %897 = vrot.lane.b32.xlu2 %v1982_v19, %s1389_s28 }
 0x6a8   :  { %911 = vrot.lane.b32.xlu1 %v1980_v9, %s1388_s27  ;;  %925 = vrot.lane.b32.xlu0 %v2002_v37, %s1387_s26 }
 0x6a9   :  { %891 = vrot.lane.b32.xlu2 %v1978_v43, %s1389_s28 }
 0x6b0   :  { %877 = vrot.lane.b32.xlu0 %v2002_v37, %s1384_s24  ;;  %941 = vrot.lane.b32.xlu1 %v2002_v37, %s1386_s25 }
 0x6b1   :  { %879 = vrot.lane.b32.xlu2 %v1980_v9, %s1384_s24 }
 0x6b8   :  { %861 = vrot.lane.b32.xlu0 %v2002_v37, %s1390_s29  ;;  %907 = vrot.lane.b32.xlu1 %v1978_v43, %s1388_s27 }
 0x6b9   :  { %863 = vrot.lane.b32.xlu2 %v1980_v9, %s1390_s29 }
 0x6c0   :  { %845 = vrot.lane.b32.xlu0 %v2002_v37, %s1392_s6  ;;  %909 = vrot.lane.b32.xlu1 %v2002_v37, %s1388_s27 }
 0x6c1   :  { %847 = vrot.lane.b32.xlu2 %v1980_v9, %s1392_s6 }
 0x6c8   :  { %875 = vrot.lane.b32.xlu0 %v1978_v43, %s1384_s24  ;;  %893 = vrot.lane.b32.xlu1 %v2002_v37, %s1389_s28 }
 0x6c9   :  { %829 = vrot.lane.b32.xlu2 %v2002_v37, %s1391_s30 }
 0x6d0   :  { %849 = vrot.lane.b32.xlu0 %v1982_v19, %s1392_s6  ;;  %881 = vrot.lane.b32.xlu1 %v1982_v19, %s1384_s24 }
 0x6d1   :  { %859 = vrot.lane.b32.xlu2 %v1978_v43, %s1390_s29 }
 0x6d8   :  { %843 = vrot.lane.b32.xlu0 %v1978_v43, %s1392_s6  ;;  %865 = vrot.lane.b32.xlu1 %v1982_v19, %s1390_s29 }
 0x6d9   :  { %827 = vrot.lane.b32.xlu2 %v1978_v43, %s1391_s30 }
 0x6e0   :  { %831 = vrot.lane.b32.xlu1 %v1980_v9, %s1391_s30 }
 0x6e8   :  { %833 = vrot.lane.b32.xlu1 %v1982_v19, %s1391_s30 }
 0x6eb   :  { %v940_v32 = vpop.permute.xlu2 %939 }
 0x6f3   :  { %v924_v51 = vpop.permute.xlu2 %923 }
 0x6fb   :  { %v898_v31 = vpop.permute.xlu2 %897 }
 0x702   :  { %v930_v60 = vpop.permute.xlu0 %929  ;;  %v944_v34 = vpop.permute.xlu1 %943 }
 0x703   :  { %v2050_v35 = vpop.permute.xlu2 %891  ;;  %v934_v2 = vsel %vm509_vm9, %v930_v60, %v924_v51 }
 0x704   :  { %v938_v15 = vmul.f32 %v1658_v0, %v934_v2 }
 0x70a   :  { %v914_v29 = vpop.permute.xlu0 %913  ;;  %v946_v46 = vpop.permute.xlu1 %945 }
 0x70b   :  { %v947_v3 = vsel %vm2197_vm8, %v944_v34, %v946_v46  ;;  %v950_v5 = vsel %vm2198_vm11, %v946_v46, %v940_v32  ;;  %v2061_v42 = vpop.permute.xlu2 %879 }
 0x70c   :  { %v953_v10 = vmul.f32 %v1608_v47, %v947_v3  ;;  %v954_v13 = vmul.f32 %v1653_v61, %v950_v5 }
 0x70e   :  { %1002 = vmatpush.msrb.mxu2 %v953_v10  ;;  %1022 = vmatpush.msrb.mxu3 %v954_v13 }
 0x710   :  { %1023 = vmatpush.msrb.mxu3 %v938_v15 }
 0x712   :  { %v896_v16 = vpop.permute.xlu0 %895  ;;  %v928_v17 = vpop.permute.xlu1 %927 }
 0x713   :  { %v931_v21 = vsel %vm509_vm9, %v928_v17, %v930_v60  ;;  %v899_v47 = vsel %vm2199_vm14, %v896_v16, %v898_v31  ;;  %v2071_v27 = vpop.permute.xlu2 %863 }
 0x714   :  { %v937_v44 = vmul.f32 %v1616_v4, %v931_v21  ;;  %v905_v46 = vmul.f32 %v1711_v25, %v899_v47 }
 0x716   :  { %1003 = vmatpush.msrb.mxu2 %v937_v44 }
 0x71a   :  { %v912_v22 = vpop.permute.xlu1 %911  ;;  %v926_v24 = vpop.permute.xlu0 %925 }
 0x71b   :  { %v915_v61 = vsel %vm2200_vm4, %v912_v22, %v914_v29  ;;  %v932_v4 = vsel %vm509_vm9, %v926_v24, %v928_v17  ;;  %v933_v3 = vsel %vm509_vm9, %v924_v51, %v926_v24  ;;  %v848_v17 = vpop.permute.xlu2 %847  ;;  %vm2203_vm9 = vmmov %vm2199_vm14 }
 0x71c   :  { %v921_v0 = vmul.f32 %v1688_v11, %v915_v61  ;;  %v936_v51 = vmul.f32 %v1736_v33, %v932_v4  ;;  %vm2207_vm8 = vmmov %vm2203_vm9 }
 0x71d   :  { %vm2208_vm11 = vmmov %vm2207_vm8 }
 0x71e   :  { %1004 = vmatpush.msrb.mxu2 %v921_v0 }
 0x720   :  { %1005 = vmatpush.msrb.mxu2 %v905_v46 }
 0x722   :  { %v878_v60 = vpop.permute.xlu0 %877  ;;  %v942_v2 = vpop.permute.xlu1 %941  ;;  %1006 = vmatpush.msrb.mxu2 %v1980_v9  ;;  %v935_v9 = vmul.f32 %v1731_v50, %v933_v3 }
 0x723   :  { %v884_v11 = vsel %vm458_vm12, %v878_v60, %v2061_v42  ;;  %v948_v5 = vsel %vm2201_vm6, %v942_v2, %v944_v34  ;;  %v949_v25 = vsel %vm2202_vm13, %v940_v32, %v942_v2  ;;  %v830_v44 = vpop.permute.xlu2 %829 }
 0x724   :  { %v889_v10 = vmul.f32 %v1779_v6, %v884_v11  ;;  %v951_v13 = vmul.f32 %v1647_v54, %v949_v25  ;;  %v952_v15 = vmul.f32 %v1650_v57, %v948_v5  ;;  %v902_v6 = vsel %vm2203_vm9, %v898_v31, %v2050_v35 }
 0x725   :  { %v906_v32 = vmul.f32 %v1701_v18, %v902_v6 }
 0x726   :  { %962 = vmatpush.msrb.mxu0 %v951_v13  ;;  %982 = vmatpush.msrb.mxu1 %v952_v15 }
 0x727   :  { %1007 = vmatpush.msrb.mxu2 %v889_v10 }
 0x728   :  { %963 = vmatpush.msrb.mxu0 %v935_v9  ;;  %983 = vmatpush.msrb.mxu1 %v936_v51 }
 0x72a   :  { %v862_v34 = vpop.permute.xlu0 %861  ;;  %v908_v21 = vpop.permute.xlu1 %907 }
 0x72b   :  { %v868_v54 = vsel %vm441_vm2, %v862_v34, %v2071_v27  ;;  %v918_v57 = vsel %vm2204_vm0, %v914_v29, %v908_v21  ;;  %v860_v4 = vpop.permute.xlu2 %859 }
 0x72c   :  { %v873_v50 = vmul.f32 %v1808_v55, %v868_v54  ;;  %v922_v33 = vmul.f32 %v1691_v12, %v918_v57 }
 0x72e   :  { %1008 = vmatpush.msrb.mxu2 %v873_v50  ;;  %1024 = vmatpush.msrb.mxu3 %v922_v33 }
 0x730   :  { %1025 = vmatpush.msrb.mxu3 %v906_v32 }
 0x732   :  { %v846_v24 = vpop.permute.xlu0 %845  ;;  %v910_v47 = vpop.permute.xlu1 %909  ;;  %1026 = vmatpush.msrb.mxu3 %v1982_v19 }
 0x733   :  { %v852_v31 = vsel %vm424_vm10, %v846_v24, %v848_v17  ;;  %v916_v29 = vsel %vm2205_vm3, %v910_v47, %v912_v22  ;;  %v917_v55 = vsel %vm2206_vm15, %v908_v21, %v910_v47 }
 0x734   :  { %v857_v12 = vmul.f32 %v1828_v28, %v852_v31  ;;  %v919_v18 = vmul.f32 %v1739_v39, %v917_v55  ;;  %v920_v61 = vmul.f32 %v1742_v59, %v916_v29  ;;  %v869_v59 = vsel %vm441_vm2, %v860_v4, %v862_v34 }
 0x736   :  { %964 = vmatpush.msrb.mxu0 %v919_v18  ;;  %984 = vmatpush.msrb.mxu1 %v920_v61 }
 0x737   :  { %1009 = vmatpush.msrb.mxu2 %v857_v12 }
 0x73a   :  { %v876_v0 = vpop.permute.xlu0 %875  ;;  %v894_v19 = vpop.permute.xlu1 %893 }
 0x73b   :  { %v900_v46 = vsel %vm2207_vm8, %v894_v19, %v896_v16  ;;  %v901_v22 = vsel %vm2208_vm11, %v2050_v35, %v894_v19  ;;  %v885_v39 = vsel %vm458_vm12, %v876_v0, %v878_v60  ;;  %v872_v35 = vmul.f32 %v1871_v63, %v869_v59 }
 0x73c   :  { %v903_v2 = vmul.f32 %v1764_v1, %v901_v22  ;;  %v904_v28 = vmul.f32 %v1769_v48, %v900_v46  ;;  %v888_v3 = vmul.f32 %v1863_v52, %v885_v39 }
 0x73e   :  { %965 = vmatpush.msrb.mxu0 %v903_v2  ;;  %985 = vmatpush.msrb.mxu1 %v904_v28 }
 0x740   :  { %966 = vmatpush.msrb.mxu0 %v1978_v43  ;;  %986 = vmatpush.msrb.mxu1 %v2002_v37  ;;  %v828_v43 = vpop.permute.xlu2 %827 }
 0x741   :  { %v837_v63 = vsel %vm407_vm5, %v828_v43, %v830_v44 }
 0x742   :  { %v850_v16 = vpop.permute.xlu0 %849  ;;  %987 = vmatpush.msrb.mxu1 %v888_v3  ;;  %v882_v1 = vpop.permute.xlu1 %881  ;;  %v840_v51 = vmul.f32 %v1928_v26, %v837_v63 }
 0x743   :  { %v883_v48 = vsel %vm458_vm12, %v2061_v42, %v882_v1  ;;  %v886_v60 = vsel %vm458_vm12, %v882_v1, %v876_v0  ;;  %v851_v10 = vsel %vm424_vm10, %v848_v17, %v850_v16 }
 0x744   :  { %v887_v11 = vmul.f32 %v1858_v41, %v886_v60  ;;  %v890_v52 = vmul.f32 %v1784_v7, %v883_v48  ;;  %988 = vmatpush.msrb.mxu1 %v872_v35 }
 0x746   :  { %967 = vmatpush.msrb.mxu0 %v887_v11  ;;  %1027 = vmatpush.msrb.mxu3 %v890_v52 }
 0x74a   :  { %v844_v37 = vpop.permute.xlu0 %843  ;;  %v866_v5 = vpop.permute.xlu1 %865 }
 0x74b   :  { %v853_v25 = vsel %vm424_vm10, %v844_v37, %v846_v24  ;;  %v854_v42 = vsel %vm424_vm10, %v850_v16, %v844_v37  ;;  %v867_v41 = vsel %vm441_vm2, %v2071_v27, %v866_v5  ;;  %v870_v7 = vsel %vm441_vm2, %v866_v5, %v860_v4 }
 0x74c   :  { %v856_v13 = vmul.f32 %v1920_v23, %v853_v25  ;;  %v871_v15 = vmul.f32 %v1868_v62, %v870_v7  ;;  %v874_v9 = vmul.f32 %v1811_v56, %v867_v41  ;;  %v855_v34 = vmul.f32 %v1915_v14, %v854_v42 }
 0x74d   :  { %v858_v27 = vmul.f32 %v1892_v8, %v851_v10 }
 0x74e   :  { %968 = vmatpush.msrb.mxu0 %v871_v15  ;;  %989 = vmatpush.msrb.mxu1 %v856_v13 }
 0x74f   :  { %1028 = vmatpush.msrb.mxu3 %v874_v9 }
 0x750   :  { %969 = vmatpush.msrb.mxu0 %v855_v34  ;;  %990 = vmatpush.msrb.mxu1 %v840_v51 }
 0x751   :  { %1029 = vmatpush.msrb.mxu3 %v858_v27  ;;  %1304 = vmatmul.msk.f32.vlgmr.msrb.gmra.mxu1 %vm536_vm1, %v1849_v38 }
 0x752   :  { %v832_v23 = vpop.permute.xlu1 %831 }
 0x753   :  { %v836_v62 = vsel %vm407_vm5, %v830_v44, %v832_v23 }
 0x754   :  { %v841_v56 = vmul.f32 %v1836_v49, %v836_v62 }
 0x756   :  { %1010 = vmatpush.msrb.mxu2 %v841_v56 }
 0x757   :  { %1305 = vmatmul.msk.f32.vlgmr.msrb.gmra.mxu2 %vm536_vm1, %v1849_v38 }
 0x75a   :  { %v834_v14 = vpop.permute.xlu1 %833 }
 0x75b   :  { %v835_v8 = vsel %vm407_vm5, %v832_v23, %v834_v14  ;;  %v838_v26 = vsel %vm407_vm5, %v834_v14, %v828_v43 }
 0x75c   :  { %v839_v17 = vmul.f32 %v1925_v45, %v838_v26  ;;  %v842_v21 = vmul.f32 %v1900_v20, %v835_v8 }
 0x75e   :  { %970 = vmatpush.msrb.mxu0 %v839_v17  ;;  %1030 = vmatpush.msrb.mxu3 %v842_v21 }
 0x75f   :  { %1306 = vmatmul.msk.f32.vlgmr.msrb.gmra.mxu3 %vm536_vm1, %v1849_v38  ;;  %1303 = vmatmul.msk.f32.vlgmr.msrb.gmra.mxu0 %vm536_vm1, %v1849_v38 }
 0x7ce   :  { %v992_v49 = vpop.f32.mrf.mxu1 }
 0x7cf   :  { %v1041_v54 = vmul.f32 %v992_v49, %v992_v49 }
 0x7da   :  { %v1012_v6 = vpop.f32.mrf.mxu2 }
 0x7db   :  { %v1042_v58 = vmul.f32 %v1012_v6, %v1012_v6 }
 0x7dc   :  { %v972_v57 = vpop.f32.mrf.mxu0 }
 0x7dd   :  { %v1040_v50 = vmul.f32 %v972_v57, %v972_v57  ;;  %v1035_v33 = vadd.f32 %v992_v49, %v972_v57 }
 0x7df   :  { %v1036_v32 = vadd.f32 %v1035_v33, %v1012_v6  ;;  %v1044_v44 = vadd.f32 %v1041_v54, %v1040_v50 }
 0x7e1   :  { %v1045_v45 = vadd.f32 %v1044_v44, %v1042_v58 }
 0x7e2   :  { %v1032_v24 = vpop.f32.mrf.mxu3 }
 0x7e3   :  { %v1037_v20 = vadd.f32 %v1036_v32, %v1032_v24  ;;  %v1043_v47 = vmul.f32 %v1032_v24, %v1032_v24 }
 0x7e5   :  { %1038 = vadd.xlane.f32.xlu1 %v1037_v20  ;;  %v1046_v31 = vadd.f32 %v1045_v45, %v1043_v47 }
 0x7e7   :  { %1047 = vadd.xlane.f32.xlu0 %v1046_v31 }
 0x858   :  { %v1039_v29 = vpop.xlane.xlu1 %1038 }
 0x859   :  { %v1049_v55 = vmul.f32 0.001953125, %v1039_v29 }
 0x85a   :  { %v1048_v12 = vpop.xlane.xlu0 %1047 }
 0x85b   :  { %v1051_v38 = vmul.f32 %v1049_v55, %v1049_v55  ;;  %v1050_v18 = vmul.f32 0.001953125, %v1048_v12 }
 0x85d   :  { %v1052_v61 = vsub.f32 %v1050_v18, %v1051_v38 }
 0x85f   :  { %v1053_v0 = vmax.f32 %v1052_v61, 0.0 }
 0x861   :  { %v1054_v19 = vadd.f32 1e-05, %v1053_v0 }
 0x863   :  { %1353 = vrsqrt.f32 %v1054_v19  ;;  %vm1061_vm12 = vweird.f32 %v1054_v19 }
 0x869   :  { %v1354_v46 = vpop.eup %1353 }
 0x86a   :  { %v1056_v22 = vmul.f32 %v1354_v46, %v1054_v19  ;;  %vm1062_vm2 = vweird.f32 %v1354_v46 }
 0x86b   :  { %vm1063_vm5 = vmor %vm1061_vm12, %vm1062_vm2 }
 0x86c   :  { %v1057_v4 = vmul.f32 %v1354_v46, %v1056_v22 }
 0x86e   :  { %v1058_v2 = vmul.f32 0.5, %v1057_v4 }
 0x870   :  { %v1059_v28 = vsub.f32 1.5, %v1058_v2 }
 0x872   :  { %v1060_v39 = vmul.f32 %v1354_v46, %v1059_v28 }
 0x874   :  { %v1064_v59 = vsel %vm1063_vm5, %v1354_v46, %v1060_v39 }
 0x875   :  { %v1065_v3 = vmul.f32 %v1949_v30, %v1064_v59 }
 0x877   :  { %v1066_v35 = vmul.f32 %v1065_v3, %v1049_v55 }
 0x879   :  { %1068 = vrot.lane.b32.xlu2 %v1066_v35, %s1384_s24 }
 0x881   :  { %1074 = vperm.xlu2 %1344, %v1065_v3  }
 0x889   :  { %1345 = vset.pattern.permute.xlu2 %v1385_v40 }
 0x8d3   :  { %v1069_v16 = vpop.permute.xlu2 %1068 }
 0x8d4   :  { %v1071_v1 = vsub.f32 %v1949_v30, %v1069_v16 }
 0x8d6   :  { %1083 = vperm.xlu2 %1345, %v1071_v1  }
 0x8db   :  { %v1075_v48 = vpop.permute.xlu2 %1074 }
 0x8dc   :  { %v1077_v60 = vmul.f32 %v1075_v48, %v972_v57  ;;  %v1078_v11 = vmul.f32 %v1075_v48, %v992_v49  ;;  %v1079_v52 = vmul.f32 %v1075_v48, %v1012_v6  ;;  %v1080_v43 = vmul.f32 %v1075_v48, %v1032_v24 }
 0x930   :  { %v1084_v63 = vpop.permute.xlu2 %1083 }
 0x931   :  { %v1086_v37 = vadd.f32 %v1084_v63, %v1077_v60  ;;  %v1087_v5 = vadd.f32 %v1084_v63, %v1078_v11  ;;  %v1088_v25 = vadd.f32 %v1084_v63, %v1079_v52  ;;  %v1089_v42 = vadd.f32 %v1084_v63, %v1080_v43 }
 0x933   :  { %v1090_v41 = vmax.f32 %v1086_v37, 0.0  ;;  %v1091_v7 = vmax.f32 %v1087_v5, 0.0  ;;  %v1092_v10 = vmax.f32 %v1088_v25, 0.0  ;;  %v1093_v13 = vmax.f32 %v1089_v42, 0.0 }
 0x935   :  { %1109 = vmatpush.msra.mxu0 %v1090_v41  ;;  %1129 = vmatpush.msra.mxu1 %v1091_v7 }
 0x936   :  { %1149 = vmatpush.msra.mxu2 %v1092_v10  ;;  %1169 = vmatpush.msra.mxu3 %v1093_v13 }
 0x937   :  { %1309 = vmatmul.msk.f32.vlgmr.msra.gmra.mxu2 %vm682_vm7, %v1958_v36  ;;  %1310 = vmatmul.msk.f32.vlgmr.msra.gmra.mxu3 %vm682_vm7, %v1958_v36 }
 0x938   :  { %1307 = vmatmul.msk.f32.vlgmr.msra.gmra.mxu0 %vm682_vm7, %v1958_v36  ;;  %1308 = vmatmul.msk.f32.vlgmr.msra.gmra.mxu1 %vm682_vm7, %v1958_v36 }
 0x9b5   :  { %v1111_v40 = vpop.f32.mrf.mxu0  ;;  %v1131_v30 = vpop.f32.mrf.mxu1 }
 0x9b6   :  { %v1179_v15 = vmul.f32 %v1111_v40, %v1111_v40  ;;  %v1180_v9 = vmul.f32 %v1131_v30, %v1131_v30  ;;  %v1174_v51 = vadd.f32 %v1131_v30, %v1111_v40 }
 0x9b8   :  { %v1183_v34 = vadd.f32 %v1180_v9, %v1179_v15 }
 0x9ba   :  { %v1151_v27 = vpop.f32.mrf.mxu2  ;;  %v1171_v23 = vpop.f32.mrf.mxu3 }
 0x9bb   :  { %v1175_v62 = vadd.f32 %v1174_v51, %v1151_v27  ;;  %v1181_v56 = vmul.f32 %v1151_v27, %v1151_v27  ;;  %v1182_v14 = vmul.f32 %v1171_v23, %v1171_v23 }
 0x9bd   :  { %v1176_v8 = vadd.f32 %v1175_v62, %v1171_v23  ;;  %v1184_v26 = vadd.f32 %v1183_v34, %v1181_v56 }
 0x9bf   :  { %1177 = vadd.xlane.f32.xlu2 %v1176_v8  ;;  %v1185_v17 = vadd.f32 %v1184_v26, %v1182_v14 }
 0x9c1   :  { %1186 = vadd.xlane.f32.xlu1 %v1185_v17 }
 0xa32   :  { %v1178_v21 = vpop.xlane.xlu2 %1177 }
 0xa33   :  { %v1188_v49 = vmul.f32 0.001953125, %v1178_v21 }
 0xa34   :  { %v1187_v6 = vpop.xlane.xlu1 %1186 }
 0xa35   :  { %v1190_v36 = vmul.f32 %v1188_v49, %v1188_v49  ;;  %v1189_v54 = vmul.f32 0.001953125, %v1187_v6 }
 0xa37   :  { %v1191_v57 = vsub.f32 %v1189_v54, %v1190_v36 }
 0xa39   :  { %v1192_v50 = vmax.f32 %v1191_v57, 0.0 }
 0xa3b   :  { %v1193_v33 = vadd.f32 1e-05, %v1192_v50 }
 0xa3d   :  { %1355 = vrsqrt.f32 %v1193_v33  ;;  %vm1200_vm1 = vweird.f32 %v1193_v33 }
 0xa43   :  { %v1356_v58 = vpop.eup %1355 }
 0xa44   :  { %v1195_v32 = vmul.f32 %v1356_v58, %v1193_v33  ;;  %vm1201_vm10 = vweird.f32 %v1356_v58 }
 0xa45   :  { %vm1202_vm7 = vmor %vm1200_vm1, %vm1201_vm10 }
 0xa46   :  { %v1196_v44 = vmul.f32 %v1356_v58, %v1195_v32 }
 0xa48   :  { %v1197_v45 = vmul.f32 0.5, %v1196_v44 }
 0xa4a   :  { %v1198_v24 = vsub.f32 1.5, %v1197_v45 }
 0xa4c   :  { %v1199_v20 = vmul.f32 %v1356_v58, %v1198_v24 }
 0xa4e   :  { %v1203_v47 = vsel %vm1202_vm7, %v1356_v58, %v1199_v20 }
 0xa4f   :  { %v1204_v31 = vmul.f32 %v1971_v53, %v1203_v47 }
 0xa51   :  { %1213 = vperm.xlu1 %1339, %v1204_v31   ;;  %v1205_v29 = vmul.f32 %v1204_v31, %v1188_v49 }
 0xa53   :  { %1207 = vrot.lane.b32.xlu0 %v1205_v29, %s1384_s24 }
 0xac3   :  { %v1214_v38 = vpop.permute.xlu1 %1213 }
 0xac4   :  { %v1216_v18 = vmul.f32 %v1214_v38, %v1111_v40  ;;  %v1217_v61 = vmul.f32 %v1214_v38, %v1131_v30  ;;  %v1218_v0 = vmul.f32 %v1214_v38, %v1151_v27  ;;  %v1219_v19 = vmul.f32 %v1214_v38, %v1171_v23 }
 0xac5   :  { %v1208_v55 = vpop.permute.xlu0 %1207 }
 0xac6   :  { %v1210_v12 = vsub.f32 %v1971_v53, %v1208_v55 }
 0xac8   :  { %1222 = vperm.xlu0 %1346, %v1210_v12  }
 0xb3a   :  { %v1223_v46 = vpop.permute.xlu0 %1222 }
 0xb3b   :  { %v1225_v22 = vadd.f32 %v1223_v46, %v1216_v18  ;;  %v1226_v4 = vadd.f32 %v1223_v46, %v1217_v61  ;;  %v1227_v2 = vadd.f32 %v1223_v46, %v1218_v0  ;;  %v1228_v28 = vadd.f32 %v1223_v46, %v1219_v19 }
 0xb3d   :  { %v1229_v39 = vmax.f32 %v1225_v22, 0.0  ;;  %v1230_v59 = vmax.f32 %v1226_v4, 0.0  ;;  %v1231_v3 = vmax.f32 %v1227_v2, 0.0  ;;  %v1232_v53 = vmax.f32 %v1228_v28, 0.0 }
 0xb3f   :  { %1233 = vst [vmem:[#allocation2] sm:$0xff] %v1229_v39 }
 0xb40   :  { %1234 = vst [vmem:[#allocation2 + $0x8] sm:$0xff] %v1230_v59 }
 0xb41   :  { %1235 = vst [vmem:[#allocation2 + $0x10] sm:$0xff] %v1231_v3 }
 0xb42   :  { %1236 = vst [vmem:[#allocation2 + $0x18] sm:$0xff] %v1232_v53 }
 0xb43   :  { %1247 = dma.vmem_to_hbm [thread:$0]  %s1243_s13, 512, %s1245_s16, [#allocation3]  }
 0xb44   :  { %1381 = dma.done.wait [#allocation3], 512  }
 0xb45   :  { %1382 = vsyncadd [#allocation3], 4294966784 }
 0xb46   :  { %1252 = vsyncpa [#allocation3], 1 }

</bundles_post_ra>
